<compile_context>
chip_gen: v6e
topology: v6e:2x2x1
jax: 0.10.0
libtpu: 0.0.40
codegen_flags: <defaults>
</compile_context>

<pallas_src>
import functools

import jax
import jax.numpy as jnp
import numpy as np
from jax import lax
from jax.experimental import pallas as pl
from jax.experimental.pallas import tpu as pltpu

KMAX = 7
PAD = KMAX // 2
KERNEL_SIZES = [3, 5, 7]  # MixedConv2d depthwise kernel sizes


def _split_channels(num_chan, num_groups):
    split = [num_chan // num_groups for _ in range(num_groups)]
    split[0] += num_chan - sum(split)
    return split


def _round_up(x, m):
    return (x + m - 1) // m * m


def _mbblock_kernel(xin_ref, dw_ref, s2_ref, b2_ref, w3t_ref, s3_ref, b3_ref,
                    o_ref, xflat_ref, *, H, W, BASE, FL):
    # xin_ref : (1, C, H*W)        one image, channels on sublanes, spatial on lanes
    # dw_ref  : (C, 49)            packed mixed depthwise weights, tap index = kh*7+kw
    # s2/b2   : (C, 1)             folded BN2 scale / bias
    # w3t_ref : (Cout, C)          1x1 conv weight (transposed)
    # s3/b3   : (Cout, 1)          folded BN3 scale / bias
    # o_ref   : (1, Cout, H*W)     lane-dense output block
    # xflat   : (C, FL) scratch    zero-framed flattened image:
    #                              xflat[c, BASE + h*W + w] = x[c, h, w]
    C = xin_ref.shape[1]
    HW = H * W

    # ---- Zero only the halo frame (aligned stores); the interior is fully
    # ---- overwritten by the aligned copy-in below.  Re-done every grid step,
    # ---- so every megacore's scratch frame is initialized.
    xflat_ref[:, :BASE] = jnp.zeros((C, BASE), jnp.float32)
    xflat_ref[:, BASE + HW:FL] = jnp.zeros((C, FL - BASE - HW), jnp.float32)
    # BASE is a lane-tile multiple -> unmasked, aligned interior store.
    xflat_ref[:, BASE:BASE + HW] = xin_ref[0].astype(jnp.float32)

    # Hoist the framed image and the depthwise weights into resident values;
    # all 49 taps slice these values (no per-tap VMEM ref reloads).
    xv = xflat_ref[...]          # (C, FL)
    dwv = dw_ref[...]            # (C, 49)

    # Column index of every flattened output position (for W-border masking).
    col = lax.broadcasted_iota(jnp.int32, (1, HW), 1) % W

    # Tap (kh, kw) for output (h, w) reads xv[:, delta + kh*W + kw + (h*W + w)].
    delta = BASE - (PAD * W + PAD)

    # ---- Mixed depthwise conv: 49 taps, each a uniform lane shift of the
    # ---- lane-dense (C, HW) window; vertical 'same' padding comes from the
    # ---- zero frame, horizontal padding from the per-kw column mask.
    acc = None
    for kw in range(KMAX):
        lo = PAD - kw           # valid output columns for this kw: [lo, hi)
        hi = W + PAD - kw
        acc_kw = None
        for kh in range(KMAX):
            start = delta + kh * W + kw
            tap = kh * KMAX + kw
            patch = xv[:, start:start + HW]               # (C, HW) slice of resident value
            term = patch * dwv[:, tap:tap + 1]            # lane-broadcast weight
            acc_kw = term if acc_kw is None else acc_kw + term
        if lo > 0 or hi < W:                              # kw == PAD needs no mask
            mask = jnp.logical_and(col >= lo, col < hi)
            acc_kw = jnp.where(mask, acc_kw, 0.0)
        acc = acc_kw if acc is None else acc + acc_kw

    # ---- BN2 (eval, folded) + ReLU, elementwise on (C, HW) ----
    h_act = jnp.maximum(acc * s2_ref[...] + b2_ref[...], 0.0)

    # ---- 1x1 conv on the MXU: (Cout, C) @ (C, HW) -> (Cout, HW), + folded BN3 ----
    y = jnp.dot(w3t_ref[...], h_act, preferred_element_type=jnp.float32)
    y = y * s3_ref[...] + b3_ref[...]

    # Lane-dense (Cout, HW) store.
    o_ref[0] = y.astype(o_ref.dtype)


def mbblock_forward(x_nchw, dw_flat, scale2, bias2, w3t, scale3, bias3, stride=1):
    # TODO(synk): stride > 1 (strided MixedConv2d) not implemented.
    assert stride == 1
    N, C, H, W = x_nchw.shape
    Cout = w3t.shape[0]
    HW = H * W
    # Lane-aligned interior base and flat scratch length (covers the deepest
    # tap read BASE + HW + PAD*W + PAD, rounded to a full lane tile).
    BASE = _round_up(PAD * W + PAD, 128)
    FL = _round_up(BASE + HW + PAD * W + PAD, 128)

    # Free (bitcast) reshape only -- no transpose / pad HBM passes.
    x_flat = x_nchw.reshape(N, C, HW)

    kernel = functools.partial(_mbblock_kernel, H=H, W=W, BASE=BASE, FL=FL)

    out_flat = pl.pallas_call(
        kernel,
        out_shape=jax.ShapeDtypeStruct((N, Cout, HW), jnp.float32),
        grid_spec=pltpu.PrefetchScalarGridSpec(
            num_scalar_prefetch=0,
            grid=(N,),
            in_specs=[
                pl.BlockSpec((1, C, HW), lambda n: (n, 0, 0)),
                pl.BlockSpec((C, KMAX * KMAX), lambda n: (0, 0)),
                pl.BlockSpec((C, 1), lambda n: (0, 0)),
                pl.BlockSpec((C, 1), lambda n: (0, 0)),
                pl.BlockSpec((Cout, C), lambda n: (0, 0)),
                pl.BlockSpec((Cout, 1), lambda n: (0, 0)),
                pl.BlockSpec((Cout, 1), lambda n: (0, 0)),
            ],
            out_specs=pl.BlockSpec((1, Cout, HW), lambda n: (n, 0, 0)),
            scratch_shapes=[pltpu.VMEM((C, FL), jnp.float32)],
        ),
        compiler_params=pltpu.CompilerParams(
            dimension_semantics=("parallel",),
            vmem_limit_bytes=32 * 1024 * 1024,
        ),
    )(x_flat, dw_flat, scale2, bias2, w3t, scale3, bias3)

    # Free reshape back to NCHW.
    return out_flat.reshape(N, Cout, H, W)


if __name__ == "__main__":
    key = jax.random.PRNGKey(0)
    ks = jax.random.split(key, 10)

    # Small shapes consistent with the module (NCHW input).
    N, C, H, W = 2, 8, 16, 16
    Cout = 16
    eps = 1e-5

    x = jax.random.normal(ks[0], (N, C, H, W), jnp.float32)

    # --- MixedConv2d depthwise weights, packed into a single [7,7,C] tensor ---
    splits = _split_channels(C, len(KERNEL_SIZES))
    dw_np = np.zeros((KMAX, KMAX, C), np.float32)
    c0 = 0
    for gi, (k, cg) in enumerate(zip(KERNEL_SIZES, splits)):
        wg = jax.random.normal(ks[1 + gi], (k, k, cg), jnp.float32) * 0.1
        off = (KMAX - k) // 2
        dw_np[off:off + k, off:off + k, c0:c0 + cg] = np.asarray(wg)
        c0 += cg
    dw_packed = jnp.asarray(dw_np)                                        # (7,7,C)  (reference)
    dw_flat = jnp.transpose(dw_packed, (2, 0, 1)).reshape(C, KMAX * KMAX)  # (C,49)  (kernel)

    # --- BatchNorm2d (eval mode) folded into per-channel scale/bias ---
    gamma2 = jax.random.uniform(ks[4], (C,), minval=0.5, maxval=1.5)
    beta2 = jax.random.normal(ks[5], (C,)) * 0.1
    rmean2 = jax.random.normal(ks[6], (C,)) * 0.1
    rvar2 = jax.random.uniform(ks[7], (C,), minval=0.5, maxval=1.5)
    inv2 = gamma2 / jnp.sqrt(rvar2 + eps)
    scale2 = inv2.reshape(C, 1)
    bias2 = (beta2 - rmean2 * inv2).reshape(C, 1)

    # --- 1x1 conv weight (PyTorch [Cout, C, 1, 1] -> [Cout, C]) ---
    w3t = jax.random.normal(ks[8], (Cout, C), jnp.float32) * 0.1

    gamma3 = jnp.ones((Cout,), jnp.float32)
    beta3 = jnp.zeros((Cout,), jnp.float32)
    rmean3 = jax.random.normal(ks[9], (Cout,)) * 0.05
    rvar3 = jnp.full((Cout,), 0.8, jnp.float32)
    inv3 = gamma3 / jnp.sqrt(rvar3 + eps)
    scale3 = inv3.reshape(Cout, 1)
    bias3 = (beta3 - rmean3 * inv3).reshape(Cout, 1)

    # --- Run Pallas kernel ---
    out = mbblock_forward(x, dw_flat, scale2, bias2, w3t, scale3, bias3)
    out = jax.block_until_ready(out)

    # --- Plain-JAX reference for validation ---
    x_nhwc = jnp.transpose(x, (0, 2, 3, 1))
    w_hwio = dw_packed.reshape(KMAX, KMAX, 1, C)
    dw_out = lax.conv_general_dilated(
        x_nhwc, w_hwio, window_strides=(1, 1), padding=[(PAD, PAD), (PAD, PAD)],
        dimension_numbers=('NHWC', 'HWIO', 'NHWC'), feature_group_count=C)
    h_ref = jnp.maximum(dw_out * scale2[:, 0] + bias2[:, 0], 0.0)
    y_ref = jnp.einsum('nhwc,oc->nhwo', h_ref, w3t)
    y_ref = y_ref * scale3[:, 0] + bias3[:, 0]
    ref = jnp.transpose(y_ref, (0, 3, 1, 2))

    np.testing.assert_allclose(np.asarray(out), np.asarray(ref), rtol=1e-4, atol=1e-4)
    print("KERNEL_OK")
</pallas_src>

<mosaic_0001>
module attributes {stable_mosaic.version = 11 : i64} {
  func.func @_mbblock_kernel(%arg0: i32, %arg1: memref<1x8x256xf32, #tpu.memory_space<vmem>>, %arg2: memref<8x49xf32, #tpu.memory_space<vmem>>, %arg3: memref<8x1xf32, #tpu.memory_space<vmem>>, %arg4: memref<8x1xf32, #tpu.memory_space<vmem>>, %arg5: memref<16x8xf32, #tpu.memory_space<vmem>>, %arg6: memref<16x1xf32, #tpu.memory_space<vmem>>, %arg7: memref<16x1xf32, #tpu.memory_space<vmem>>, %arg8: memref<1x16x256xf32, #tpu.memory_space<vmem>>, %arg9: memref<8x512xf32, #tpu.memory_space<vmem>>) attributes {dimension_semantics = [#tpu.dimension_semantics<parallel>], iteration_bounds = array<i64: 2>, scalar_prefetch = 0 : i64, scratch_operands = 1 : i64, tpu.core_type = #tpu.core_type<tc>, window_params = [{transform_indices = @transform_0, window_bounds = array<i64: 1, 8, 256>}, {pipeline_mode = #tpu.pipeline_mode<synchronous>, transform_indices = @transform_1, window_bounds = array<i64: 8, 49>}, {pipeline_mode = #tpu.pipeline_mode<synchronous>, transform_indices = @transform_2, window_bounds = array<i64: 8, 1>}, {pipeline_mode = #tpu.pipeline_mode<synchronous>, transform_indices = @transform_3, window_bounds = array<i64: 8, 1>}, {pipeline_mode = #tpu.pipeline_mode<synchronous>, transform_indices = @transform_4, window_bounds = array<i64: 16, 8>}, {pipeline_mode = #tpu.pipeline_mode<synchronous>, transform_indices = @transform_5, window_bounds = array<i64: 16, 1>}, {pipeline_mode = #tpu.pipeline_mode<synchronous>, transform_indices = @transform_6, window_bounds = array<i64: 16, 1>}, {transform_indices = @transform_7, window_bounds = array<i64: 1, 16, 256>}]} {
    %cst = arith.constant 0.000000e+00 : f32
    %0 = vector.broadcast %cst : f32 to vector<8x128xf32>
    %c0 = arith.constant 0 : index
    %c0_0 = arith.constant 0 : index
    %1 = vector.load %arg9[%c0, %c0_0] : memref<8x512xf32, #tpu.memory_space<vmem>>, vector<8x128xf32>
    tpu.vector_store %arg9[%c0, %c0_0], %0 {strides = array<i32>} : memref<8x512xf32, #tpu.memory_space<vmem>>, vector<8x128xf32>,
    %cst_1 = arith.constant 0.000000e+00 : f32
    %2 = vector.broadcast %cst_1 : f32 to vector<8x128xf32>
    %c0_2 = arith.constant 0 : index
    %c384 = arith.constant 384 : index
    %3 = vector.load %arg9[%c0_2, %c384] : memref<8x512xf32, #tpu.memory_space<vmem>>, vector<8x128xf32>
    tpu.vector_store %arg9[%c0_2, %c384], %2 {strides = array<i32>} : memref<8x512xf32, #tpu.memory_space<vmem>>, vector<8x128xf32>,
    %c0_3 = arith.constant 0 : index
    %c0_4 = arith.constant 0 : index
    %c0_5 = arith.constant 0 : index
    %4 = vector.load %arg1[%c0_3, %c0_4, %c0_5] : memref<1x8x256xf32, #tpu.memory_space<vmem>>, vector<1x8x256xf32>
    %5 = vector.shape_cast %4 : vector<1x8x256xf32> to vector<8x256xf32>
    %c0_6 = arith.constant 0 : index
    %c128 = arith.constant 128 : index
    %6 = vector.load %arg9[%c0_6, %c128] : memref<8x512xf32, #tpu.memory_space<vmem>>, vector<8x256xf32>
    tpu.vector_store %arg9[%c0_6, %c128], %5 {strides = array<i32>} : memref<8x512xf32, #tpu.memory_space<vmem>>, vector<8x256xf32>,
    %c0_7 = arith.constant 0 : index
    %c0_8 = arith.constant 0 : index
    %7 = vector.load %arg9[%c0_7, %c0_8] : memref<8x512xf32, #tpu.memory_space<vmem>>, vector<8x512xf32>
    %c0_9 = arith.constant 0 : index
    %c0_10 = arith.constant 0 : index
    %8 = vector.load %arg2[%c0_9, %c0_10] : memref<8x49xf32, #tpu.memory_space<vmem>>, vector<8x49xf32>
    %9 = tpu.iota {dimensions = array<i32: 1>} : vector<1x256xi32>
    %c16_i32 = arith.constant 16 : i32
    %c0_i32 = arith.constant 0 : i32
    %10 = arith.cmpi eq, %c16_i32, %c0_i32 : i32
    %c1_i32 = arith.constant 1 : i32
    %11 = arith.select %10, %c1_i32, %c16_i32 : i32
    %12 = vector.broadcast %11 : i32 to vector<1x256xi32>
    %13 = arith.remsi %9, %12 : vector<1x256xi32>
    %c0_i32_11 = arith.constant 0 : i32
    %14 = vector.broadcast %c0_i32_11 : i32 to vector<1x256xi32>
    %15 = arith.cmpi ne, %13, %14 : vector<1x256xi32>
    %c0_i32_12 = arith.constant 0 : i32
    %16 = vector.broadcast %c0_i32_12 : i32 to vector<1x256xi32>
    %17 = arith.cmpi slt, %13, %16 : vector<1x256xi32>
    %c0_i32_13 = arith.constant 0 : i32
    %18 = arith.cmpi slt, %11, %c0_i32_13 : i32
    %19 = vector.broadcast %18 : i1 to vector<1x256xi1>
    %20 = vector.broadcast %19 : vector<1x256xi1> to vector<1x256xi1>
    %21 = arith.xori %17, %20 : vector<1x256xi1>
    %22 = arith.andi %21, %15 : vector<1x256xi1>
    %23 = vector.broadcast %11 : i32 to vector<1x256xi32>
    %24 = arith.addi %13, %23 : vector<1x256xi32>
    %25 = arith.select %22, %24, %13 : vector<1x256xi1>, vector<1x256xi32>
    %26 = vector.extract_strided_slice %7 {offsets = [0, 77], sizes = [8, 256], strides = [1, 1]} : vector<8x512xf32> to vector<8x256xf32>
    %27 = vector.extract_strided_slice %8 {offsets = [0, 0], sizes = [8, 1], strides = [1, 1]} : vector<8x49xf32> to vector<8x1xf32>
    %28 = vector.broadcast %27 : vector<8x1xf32> to vector<8x256xf32>
    %29 = arith.mulf %26, %28 : vector<8x256xf32>
    %30 = vector.extract_strided_slice %7 {offsets = [0, 93], sizes = [8, 256], strides = [1, 1]} : vector<8x512xf32> to vector<8x256xf32>
    %31 = vector.extract_strided_slice %8 {offsets = [0, 7], sizes = [8, 1], strides = [1, 1]} : vector<8x49xf32> to vector<8x1xf32>
    %32 = vector.broadcast %31 : vector<8x1xf32> to vector<8x256xf32>
    %33 = arith.mulf %30, %32 : vector<8x256xf32>
    %34 = arith.addf %29, %33 : vector<8x256xf32>
    %35 = vector.extract_strided_slice %7 {offsets = [0, 109], sizes = [8, 256], strides = [1, 1]} : vector<8x512xf32> to vector<8x256xf32>
    %36 = vector.extract_strided_slice %8 {offsets = [0, 14], sizes = [8, 1], strides = [1, 1]} : vector<8x49xf32> to vector<8x1xf32>
    %37 = vector.broadcast %36 : vector<8x1xf32> to vector<8x256xf32>
    %38 = arith.mulf %35, %37 : vector<8x256xf32>
    %39 = arith.addf %34, %38 : vector<8x256xf32>
    %40 = vector.extract_strided_slice %7 {offsets = [0, 125], sizes = [8, 256], strides = [1, 1]} : vector<8x512xf32> to vector<8x256xf32>
    %41 = vector.extract_strided_slice %8 {offsets = [0, 21], sizes = [8, 1], strides = [1, 1]} : vector<8x49xf32> to vector<8x1xf32>
    %42 = vector.broadcast %41 : vector<8x1xf32> to vector<8x256xf32>
    %43 = arith.mulf %40, %42 : vector<8x256xf32>
    %44 = arith.addf %39, %43 : vector<8x256xf32>
    %45 = vector.extract_strided_slice %7 {offsets = [0, 141], sizes = [8, 256], strides = [1, 1]} : vector<8x512xf32> to vector<8x256xf32>
    %46 = vector.extract_strided_slice %8 {offsets = [0, 28], sizes = [8, 1], strides = [1, 1]} : vector<8x49xf32> to vector<8x1xf32>
    %47 = vector.broadcast %46 : vector<8x1xf32> to vector<8x256xf32>
    %48 = arith.mulf %45, %47 : vector<8x256xf32>
    %49 = arith.addf %44, %48 : vector<8x256xf32>
    %50 = vector.extract_strided_slice %7 {offsets = [0, 157], sizes = [8, 256], strides = [1, 1]} : vector<8x512xf32> to vector<8x256xf32>
    %51 = vector.extract_strided_slice %8 {offsets = [0, 35], sizes = [8, 1], strides = [1, 1]} : vector<8x49xf32> to vector<8x1xf32>
    %52 = vector.broadcast %51 : vector<8x1xf32> to vector<8x256xf32>
    %53 = arith.mulf %50, %52 : vector<8x256xf32>
    %54 = arith.addf %49, %53 : vector<8x256xf32>
    %55 = vector.extract_strided_slice %7 {offsets = [0, 173], sizes = [8, 256], strides = [1, 1]} : vector<8x512xf32> to vector<8x256xf32>
    %56 = vector.extract_strided_slice %8 {offsets = [0, 42], sizes = [8, 1], strides = [1, 1]} : vector<8x49xf32> to vector<8x1xf32>
    %57 = vector.broadcast %56 : vector<8x1xf32> to vector<8x256xf32>
    %58 = arith.mulf %55, %57 : vector<8x256xf32>
    %59 = arith.addf %54, %58 : vector<8x256xf32>
    %c3_i32 = arith.constant 3 : i32
    %60 = vector.broadcast %c3_i32 : i32 to vector<1x256xi32>
    %61 = arith.cmpi sge, %25, %60 : vector<1x256xi32>
    %c19_i32 = arith.constant 19 : i32
    %62 = vector.broadcast %c19_i32 : i32 to vector<1x256xi32>
    %63 = arith.cmpi slt, %25, %62 : vector<1x256xi32>
    %64 = arith.andi %61, %63 : vector<1x256xi1>
    %cst_14 = arith.constant 0.000000e+00 : f32
    %65 = vector.shape_cast %64 : vector<1x256xi1> to vector<1x256xi1>
    %66 = vector.broadcast %65 : vector<1x256xi1> to vector<8x256xi1>
    %67 = vector.broadcast %cst_14 : f32 to vector<8x256xf32>
    %68 = arith.select %66, %59, %67 : vector<8x256xi1>, vector<8x256xf32>
    %69 = vector.extract_strided_slice %7 {offsets = [0, 78], sizes = [8, 256], strides = [1, 1]} : vector<8x512xf32> to vector<8x256xf32>
    %70 = vector.extract_strided_slice %8 {offsets = [0, 1], sizes = [8, 1], strides = [1, 1]} : vector<8x49xf32> to vector<8x1xf32>
    %71 = vector.broadcast %70 : vector<8x1xf32> to vector<8x256xf32>
    %72 = arith.mulf %69, %71 : vector<8x256xf32>
    %73 = vector.extract_strided_slice %7 {offsets = [0, 94], sizes = [8, 256], strides = [1, 1]} : vector<8x512xf32> to vector<8x256xf32>
    %74 = vector.extract_strided_slice %8 {offsets = [0, 8], sizes = [8, 1], strides = [1, 1]} : vector<8x49xf32> to vector<8x1xf32>
    %75 = vector.broadcast %74 : vector<8x1xf32> to vector<8x256xf32>
    %76 = arith.mulf %73, %75 : vector<8x256xf32>
    %77 = arith.addf %72, %76 : vector<8x256xf32>
    %78 = vector.extract_strided_slice %7 {offsets = [0, 110], sizes = [8, 256], strides = [1, 1]} : vector<8x512xf32> to vector<8x256xf32>
    %79 = vector.extract_strided_slice %8 {offsets = [0, 15], sizes = [8, 1], strides = [1, 1]} : vector<8x49xf32> to vector<8x1xf32>
    %80 = vector.broadcast %79 : vector<8x1xf32> to vector<8x256xf32>
    %81 = arith.mulf %78, %80 : vector<8x256xf32>
    %82 = arith.addf %77, %81 : vector<8x256xf32>
    %83 = vector.extract_strided_slice %7 {offsets = [0, 126], sizes = [8, 256], strides = [1, 1]} : vector<8x512xf32> to vector<8x256xf32>
    %84 = vector.extract_strided_slice %8 {offsets = [0, 22], sizes = [8, 1], strides = [1, 1]} : vector<8x49xf32> to vector<8x1xf32>
    %85 = vector.broadcast %84 : vector<8x1xf32> to vector<8x256xf32>
    %86 = arith.mulf %83, %85 : vector<8x256xf32>
    %87 = arith.addf %82, %86 : vector<8x256xf32>
    %88 = vector.extract_strided_slice %7 {offsets = [0, 142], sizes = [8, 256], strides = [1, 1]} : vector<8x512xf32> to vector<8x256xf32>
    %89 = vector.extract_strided_slice %8 {offsets = [0, 29], sizes = [8, 1], strides = [1, 1]} : vector<8x49xf32> to vector<8x1xf32>
    %90 = vector.broadcast %89 : vector<8x1xf32> to vector<8x256xf32>
    %91 = arith.mulf %88, %90 : vector<8x256xf32>
    %92 = arith.addf %87, %91 : vector<8x256xf32>
    %93 = vector.extract_strided_slice %7 {offsets = [0, 158], sizes = [8, 256], strides = [1, 1]} : vector<8x512xf32> to vector<8x256xf32>
    %94 = vector.extract_strided_slice %8 {offsets = [0, 36], sizes = [8, 1], strides = [1, 1]} : vector<8x49xf32> to vector<8x1xf32>
    %95 = vector.broadcast %94 : vector<8x1xf32> to vector<8x256xf32>
    %96 = arith.mulf %93, %95 : vector<8x256xf32>
    %97 = arith.addf %92, %96 : vector<8x256xf32>
    %98 = vector.extract_strided_slice %7 {offsets = [0, 174], sizes = [8, 256], strides = [1, 1]} : vector<8x512xf32> to vector<8x256xf32>
    %99 = vector.extract_strided_slice %8 {offsets = [0, 43], sizes = [8, 1], strides = [1, 1]} : vector<8x49xf32> to vector<8x1xf32>
    %100 = vector.broadcast %99 : vector<8x1xf32> to vector<8x256xf32>
    %101 = arith.mulf %98, %100 : vector<8x256xf32>
    %102 = arith.addf %97, %101 : vector<8x256xf32>
    %c2_i32 = arith.constant 2 : i32
    %103 = vector.broadcast %c2_i32 : i32 to vector<1x256xi32>
    %104 = arith.cmpi sge, %25, %103 : vector<1x256xi32>
    %c18_i32 = arith.constant 18 : i32
    %105 = vector.broadcast %c18_i32 : i32 to vector<1x256xi32>
    %106 = arith.cmpi slt, %25, %105 : vector<1x256xi32>
    %107 = arith.andi %104, %106 : vector<1x256xi1>
    %cst_15 = arith.constant 0.000000e+00 : f32
    %108 = vector.shape_cast %107 : vector<1x256xi1> to vector<1x256xi1>
    %109 = vector.broadcast %108 : vector<1x256xi1> to vector<8x256xi1>
    %110 = vector.broadcast %cst_15 : f32 to vector<8x256xf32>
    %111 = arith.select %109, %102, %110 : vector<8x256xi1>, vector<8x256xf32>
    %112 = arith.addf %68, %111 : vector<8x256xf32>
    %113 = vector.extract_strided_slice %7 {offsets = [0, 79], sizes = [8, 256], strides = [1, 1]} : vector<8x512xf32> to vector<8x256xf32>
    %114 = vector.extract_strided_slice %8 {offsets = [0, 2], sizes = [8, 1], strides = [1, 1]} : vector<8x49xf32> to vector<8x1xf32>
    %115 = vector.broadcast %114 : vector<8x1xf32> to vector<8x256xf32>
    %116 = arith.mulf %113, %115 : vector<8x256xf32>
    %117 = vector.extract_strided_slice %7 {offsets = [0, 95], sizes = [8, 256], strides = [1, 1]} : vector<8x512xf32> to vector<8x256xf32>
    %118 = vector.extract_strided_slice %8 {offsets = [0, 9], sizes = [8, 1], strides = [1, 1]} : vector<8x49xf32> to vector<8x1xf32>
    %119 = vector.broadcast %118 : vector<8x1xf32> to vector<8x256xf32>
    %120 = arith.mulf %117, %119 : vector<8x256xf32>
    %121 = arith.addf %116, %120 : vector<8x256xf32>
    %122 = vector.extract_strided_slice %7 {offsets = [0, 111], sizes = [8, 256], strides = [1, 1]} : vector<8x512xf32> to vector<8x256xf32>
    %123 = vector.extract_strided_slice %8 {offsets = [0, 16], sizes = [8, 1], strides = [1, 1]} : vector<8x49xf32> to vector<8x1xf32>
    %124 = vector.broadcast %123 : vector<8x1xf32> to vector<8x256xf32>
    %125 = arith.mulf %122, %124 : vector<8x256xf32>
    %126 = arith.addf %121, %125 : vector<8x256xf32>
    %127 = vector.extract_strided_slice %7 {offsets = [0, 127], sizes = [8, 256], strides = [1, 1]} : vector<8x512xf32> to vector<8x256xf32>
    %128 = vector.extract_strided_slice %8 {offsets = [0, 23], sizes = [8, 1], strides = [1, 1]} : vector<8x49xf32> to vector<8x1xf32>
    %129 = vector.broadcast %128 : vector<8x1xf32> to vector<8x256xf32>
    %130 = arith.mulf %127, %129 : vector<8x256xf32>
    %131 = arith.addf %126, %130 : vector<8x256xf32>
    %132 = vector.extract_strided_slice %7 {offsets = [0, 143], sizes = [8, 256], strides = [1, 1]} : vector<8x512xf32> to vector<8x256xf32>
    %133 = vector.extract_strided_slice %8 {offsets = [0, 30], sizes = [8, 1], strides = [1, 1]} : vector<8x49xf32> to vector<8x1xf32>
    %134 = vector.broadcast %133 : vector<8x1xf32> to vector<8x256xf32>
    %135 = arith.mulf %132, %134 : vector<8x256xf32>
    %136 = arith.addf %131, %135 : vector<8x256xf32>
    %137 = vector.extract_strided_slice %7 {offsets = [0, 159], sizes = [8, 256], strides = [1, 1]} : vector<8x512xf32> to vector<8x256xf32>
    %138 = vector.extract_strided_slice %8 {offsets = [0, 37], sizes = [8, 1], strides = [1, 1]} : vector<8x49xf32> to vector<8x1xf32>
    %139 = vector.broadcast %138 : vector<8x1xf32> to vector<8x256xf32>
    %140 = arith.mulf %137, %139 : vector<8x256xf32>
    %141 = arith.addf %136, %140 : vector<8x256xf32>
    %142 = vector.extract_strided_slice %7 {offsets = [0, 175], sizes = [8, 256], strides = [1, 1]} : vector<8x512xf32> to vector<8x256xf32>
    %143 = vector.extract_strided_slice %8 {offsets = [0, 44], sizes = [8, 1], strides = [1, 1]} : vector<8x49xf32> to vector<8x1xf32>
    %144 = vector.broadcast %143 : vector<8x1xf32> to vector<8x256xf32>
    %145 = arith.mulf %142, %144 : vector<8x256xf32>
    %146 = arith.addf %141, %145 : vector<8x256xf32>
    %c1_i32_16 = arith.constant 1 : i32
    %147 = vector.broadcast %c1_i32_16 : i32 to vector<1x256xi32>
    %148 = arith.cmpi sge, %25, %147 : vector<1x256xi32>
    %c17_i32 = arith.constant 17 : i32
    %149 = vector.broadcast %c17_i32 : i32 to vector<1x256xi32>
    %150 = arith.cmpi slt, %25, %149 : vector<1x256xi32>
    %151 = arith.andi %148, %150 : vector<1x256xi1>
    %cst_17 = arith.constant 0.000000e+00 : f32
    %152 = vector.shape_cast %151 : vector<1x256xi1> to vector<1x256xi1>
    %153 = vector.broadcast %152 : vector<1x256xi1> to vector<8x256xi1>
    %154 = vector.broadcast %cst_17 : f32 to vector<8x256xf32>
    %155 = arith.select %153, %146, %154 : vector<8x256xi1>, vector<8x256xf32>
    %156 = arith.addf %112, %155 : vector<8x256xf32>
    %157 = vector.extract_strided_slice %7 {offsets = [0, 80], sizes = [8, 256], strides = [1, 1]} : vector<8x512xf32> to vector<8x256xf32>
    %158 = vector.extract_strided_slice %8 {offsets = [0, 3], sizes = [8, 1], strides = [1, 1]} : vector<8x49xf32> to vector<8x1xf32>
    %159 = vector.broadcast %158 : vector<8x1xf32> to vector<8x256xf32>
    %160 = arith.mulf %157, %159 : vector<8x256xf32>
    %161 = vector.extract_strided_slice %7 {offsets = [0, 96], sizes = [8, 256], strides = [1, 1]} : vector<8x512xf32> to vector<8x256xf32>
    %162 = vector.extract_strided_slice %8 {offsets = [0, 10], sizes = [8, 1], strides = [1, 1]} : vector<8x49xf32> to vector<8x1xf32>
    %163 = vector.broadcast %162 : vector<8x1xf32> to vector<8x256xf32>
    %164 = arith.mulf %161, %163 : vector<8x256xf32>
    %165 = arith.addf %160, %164 : vector<8x256xf32>
    %166 = vector.extract_strided_slice %7 {offsets = [0, 112], sizes = [8, 256], strides = [1, 1]} : vector<8x512xf32> to vector<8x256xf32>
    %167 = vector.extract_strided_slice %8 {offsets = [0, 17], sizes = [8, 1], strides = [1, 1]} : vector<8x49xf32> to vector<8x1xf32>
    %168 = vector.broadcast %167 : vector<8x1xf32> to vector<8x256xf32>
    %169 = arith.mulf %166, %168 : vector<8x256xf32>
    %170 = arith.addf %165, %169 : vector<8x256xf32>
    %171 = vector.extract_strided_slice %7 {offsets = [0, 128], sizes = [8, 256], strides = [1, 1]} : vector<8x512xf32> to vector<8x256xf32>
    %172 = vector.extract_strided_slice %8 {offsets = [0, 24], sizes = [8, 1], strides = [1, 1]} : vector<8x49xf32> to vector<8x1xf32>
    %173 = vector.broadcast %172 : vector<8x1xf32> to vector<8x256xf32>
    %174 = arith.mulf %171, %173 : vector<8x256xf32>
    %175 = arith.addf %170, %174 : vector<8x256xf32>
    %176 = vector.extract_strided_slice %7 {offsets = [0, 144], sizes = [8, 256], strides = [1, 1]} : vector<8x512xf32> to vector<8x256xf32>
    %177 = vector.extract_strided_slice %8 {offsets = [0, 31], sizes = [8, 1], strides = [1, 1]} : vector<8x49xf32> to vector<8x1xf32>
    %178 = vector.broadcast %177 : vector<8x1xf32> to vector<8x256xf32>
    %179 = arith.mulf %176, %178 : vector<8x256xf32>
    %180 = arith.addf %175, %179 : vector<8x256xf32>
    %181 = vector.extract_strided_slice %7 {offsets = [0, 160], sizes = [8, 256], strides = [1, 1]} : vector<8x512xf32> to vector<8x256xf32>
    %182 = vector.extract_strided_slice %8 {offsets = [0, 38], sizes = [8, 1], strides = [1, 1]} : vector<8x49xf32> to vector<8x1xf32>
    %183 = vector.broadcast %182 : vector<8x1xf32> to vector<8x256xf32>
    %184 = arith.mulf %181, %183 : vector<8x256xf32>
    %185 = arith.addf %180, %184 : vector<8x256xf32>
    %186 = vector.extract_strided_slice %7 {offsets = [0, 176], sizes = [8, 256], strides = [1, 1]} : vector<8x512xf32> to vector<8x256xf32>
    %187 = vector.extract_strided_slice %8 {offsets = [0, 45], sizes = [8, 1], strides = [1, 1]} : vector<8x49xf32> to vector<8x1xf32>
    %188 = vector.broadcast %187 : vector<8x1xf32> to vector<8x256xf32>
    %189 = arith.mulf %186, %188 : vector<8x256xf32>
    %190 = arith.addf %185, %189 : vector<8x256xf32>
    %191 = arith.addf %156, %190 : vector<8x256xf32>
    %192 = vector.extract_strided_slice %7 {offsets = [0, 81], sizes = [8, 256], strides = [1, 1]} : vector<8x512xf32> to vector<8x256xf32>
    %193 = vector.extract_strided_slice %8 {offsets = [0, 4], sizes = [8, 1], strides = [1, 1]} : vector<8x49xf32> to vector<8x1xf32>
    %194 = vector.broadcast %193 : vector<8x1xf32> to vector<8x256xf32>
    %195 = arith.mulf %192, %194 : vector<8x256xf32>
    %196 = vector.extract_strided_slice %7 {offsets = [0, 97], sizes = [8, 256], strides = [1, 1]} : vector<8x512xf32> to vector<8x256xf32>
    %197 = vector.extract_strided_slice %8 {offsets = [0, 11], sizes = [8, 1], strides = [1, 1]} : vector<8x49xf32> to vector<8x1xf32>
    %198 = vector.broadcast %197 : vector<8x1xf32> to vector<8x256xf32>
    %199 = arith.mulf %196, %198 : vector<8x256xf32>
    %200 = arith.addf %195, %199 : vector<8x256xf32>
    %201 = vector.extract_strided_slice %7 {offsets = [0, 113], sizes = [8, 256], strides = [1, 1]} : vector<8x512xf32> to vector<8x256xf32>
    %202 = vector.extract_strided_slice %8 {offsets = [0, 18], sizes = [8, 1], strides = [1, 1]} : vector<8x49xf32> to vector<8x1xf32>
    %203 = vector.broadcast %202 : vector<8x1xf32> to vector<8x256xf32>
    %204 = arith.mulf %201, %203 : vector<8x256xf32>
    %205 = arith.addf %200, %204 : vector<8x256xf32>
    %206 = vector.extract_strided_slice %7 {offsets = [0, 129], sizes = [8, 256], strides = [1, 1]} : vector<8x512xf32> to vector<8x256xf32>
    %207 = vector.extract_strided_slice %8 {offsets = [0, 25], sizes = [8, 1], strides = [1, 1]} : vector<8x49xf32> to vector<8x1xf32>
    %208 = vector.broadcast %207 : vector<8x1xf32> to vector<8x256xf32>
    %209 = arith.mulf %206, %208 : vector<8x256xf32>
    %210 = arith.addf %205, %209 : vector<8x256xf32>
    %211 = vector.extract_strided_slice %7 {offsets = [0, 145], sizes = [8, 256], strides = [1, 1]} : vector<8x512xf32> to vector<8x256xf32>
    %212 = vector.extract_strided_slice %8 {offsets = [0, 32], sizes = [8, 1], strides = [1, 1]} : vector<8x49xf32> to vector<8x1xf32>
    %213 = vector.broadcast %212 : vector<8x1xf32> to vector<8x256xf32>
    %214 = arith.mulf %211, %213 : vector<8x256xf32>
    %215 = arith.addf %210, %214 : vector<8x256xf32>
    %216 = vector.extract_strided_slice %7 {offsets = [0, 161], sizes = [8, 256], strides = [1, 1]} : vector<8x512xf32> to vector<8x256xf32>
    %217 = vector.extract_strided_slice %8 {offsets = [0, 39], sizes = [8, 1], strides = [1, 1]} : vector<8x49xf32> to vector<8x1xf32>
    %218 = vector.broadcast %217 : vector<8x1xf32> to vector<8x256xf32>
    %219 = arith.mulf %216, %218 : vector<8x256xf32>
    %220 = arith.addf %215, %219 : vector<8x256xf32>
    %221 = vector.extract_strided_slice %7 {offsets = [0, 177], sizes = [8, 256], strides = [1, 1]} : vector<8x512xf32> to vector<8x256xf32>
    %222 = vector.extract_strided_slice %8 {offsets = [0, 46], sizes = [8, 1], strides = [1, 1]} : vector<8x49xf32> to vector<8x1xf32>
    %223 = vector.broadcast %222 : vector<8x1xf32> to vector<8x256xf32>
    %224 = arith.mulf %221, %223 : vector<8x256xf32>
    %225 = arith.addf %220, %224 : vector<8x256xf32>
    %c-1_i32 = arith.constant -1 : i32
    %226 = vector.broadcast %c-1_i32 : i32 to vector<1x256xi32>
    %227 = arith.cmpi sge, %25, %226 : vector<1x256xi32>
    %c15_i32 = arith.constant 15 : i32
    %228 = vector.broadcast %c15_i32 : i32 to vector<1x256xi32>
    %229 = arith.cmpi slt, %25, %228 : vector<1x256xi32>
    %230 = arith.andi %227, %229 : vector<1x256xi1>
    %cst_18 = arith.constant 0.000000e+00 : f32
    %231 = vector.shape_cast %230 : vector<1x256xi1> to vector<1x256xi1>
    %232 = vector.broadcast %231 : vector<1x256xi1> to vector<8x256xi1>
    %233 = vector.broadcast %cst_18 : f32 to vector<8x256xf32>
    %234 = arith.select %232, %225, %233 : vector<8x256xi1>, vector<8x256xf32>
    %235 = arith.addf %191, %234 : vector<8x256xf32>
    %236 = vector.extract_strided_slice %7 {offsets = [0, 82], sizes = [8, 256], strides = [1, 1]} : vector<8x512xf32> to vector<8x256xf32>
    %237 = vector.extract_strided_slice %8 {offsets = [0, 5], sizes = [8, 1], strides = [1, 1]} : vector<8x49xf32> to vector<8x1xf32>
    %238 = vector.broadcast %237 : vector<8x1xf32> to vector<8x256xf32>
    %239 = arith.mulf %236, %238 : vector<8x256xf32>
    %240 = vector.extract_strided_slice %7 {offsets = [0, 98], sizes = [8, 256], strides = [1, 1]} : vector<8x512xf32> to vector<8x256xf32>
    %241 = vector.extract_strided_slice %8 {offsets = [0, 12], sizes = [8, 1], strides = [1, 1]} : vector<8x49xf32> to vector<8x1xf32>
    %242 = vector.broadcast %241 : vector<8x1xf32> to vector<8x256xf32>
    %243 = arith.mulf %240, %242 : vector<8x256xf32>
    %244 = arith.addf %239, %243 : vector<8x256xf32>
    %245 = vector.extract_strided_slice %7 {offsets = [0, 114], sizes = [8, 256], strides = [1, 1]} : vector<8x512xf32> to vector<8x256xf32>
    %246 = vector.extract_strided_slice %8 {offsets = [0, 19], sizes = [8, 1], strides = [1, 1]} : vector<8x49xf32> to vector<8x1xf32>
    %247 = vector.broadcast %246 : vector<8x1xf32> to vector<8x256xf32>
    %248 = arith.mulf %245, %247 : vector<8x256xf32>
    %249 = arith.addf %244, %248 : vector<8x256xf32>
    %250 = vector.extract_strided_slice %7 {offsets = [0, 130], sizes = [8, 256], strides = [1, 1]} : vector<8x512xf32> to vector<8x256xf32>
    %251 = vector.extract_strided_slice %8 {offsets = [0, 26], sizes = [8, 1], strides = [1, 1]} : vector<8x49xf32> to vector<8x1xf32>
    %252 = vector.broadcast %251 : vector<8x1xf32> to vector<8x256xf32>
    %253 = arith.mulf %250, %252 : vector<8x256xf32>
    %254 = arith.addf %249, %253 : vector<8x256xf32>
    %255 = vector.extract_strided_slice %7 {offsets = [0, 146], sizes = [8, 256], strides = [1, 1]} : vector<8x512xf32> to vector<8x256xf32>
    %256 = vector.extract_strided_slice %8 {offsets = [0, 33], sizes = [8, 1], strides = [1, 1]} : vector<8x49xf32> to vector<8x1xf32>
    %257 = vector.broadcast %256 : vector<8x1xf32> to vector<8x256xf32>
    %258 = arith.mulf %255, %257 : vector<8x256xf32>
    %259 = arith.addf %254, %258 : vector<8x256xf32>
    %260 = vector.extract_strided_slice %7 {offsets = [0, 162], sizes = [8, 256], strides = [1, 1]} : vector<8x512xf32> to vector<8x256xf32>
    %261 = vector.extract_strided_slice %8 {offsets = [0, 40], sizes = [8, 1], strides = [1, 1]} : vector<8x49xf32> to vector<8x1xf32>
    %262 = vector.broadcast %261 : vector<8x1xf32> to vector<8x256xf32>
    %263 = arith.mulf %260, %262 : vector<8x256xf32>
    %264 = arith.addf %259, %263 : vector<8x256xf32>
    %265 = vector.extract_strided_slice %7 {offsets = [0, 178], sizes = [8, 256], strides = [1, 1]} : vector<8x512xf32> to vector<8x256xf32>
    %266 = vector.extract_strided_slice %8 {offsets = [0, 47], sizes = [8, 1], strides = [1, 1]} : vector<8x49xf32> to vector<8x1xf32>
    %267 = vector.broadcast %266 : vector<8x1xf32> to vector<8x256xf32>
    %268 = arith.mulf %265, %267 : vector<8x256xf32>
    %269 = arith.addf %264, %268 : vector<8x256xf32>
    %c-2_i32 = arith.constant -2 : i32
    %270 = vector.broadcast %c-2_i32 : i32 to vector<1x256xi32>
    %271 = arith.cmpi sge, %25, %270 : vector<1x256xi32>
    %c14_i32 = arith.constant 14 : i32
    %272 = vector.broadcast %c14_i32 : i32 to vector<1x256xi32>
    %273 = arith.cmpi slt, %25, %272 : vector<1x256xi32>
    %274 = arith.andi %271, %273 : vector<1x256xi1>
    %cst_19 = arith.constant 0.000000e+00 : f32
    %275 = vector.shape_cast %274 : vector<1x256xi1> to vector<1x256xi1>
    %276 = vector.broadcast %275 : vector<1x256xi1> to vector<8x256xi1>
    %277 = vector.broadcast %cst_19 : f32 to vector<8x256xf32>
    %278 = arith.select %276, %269, %277 : vector<8x256xi1>, vector<8x256xf32>
    %279 = arith.addf %235, %278 : vector<8x256xf32>
    %280 = vector.extract_strided_slice %7 {offsets = [0, 83], sizes = [8, 256], strides = [1, 1]} : vector<8x512xf32> to vector<8x256xf32>
    %281 = vector.extract_strided_slice %8 {offsets = [0, 6], sizes = [8, 1], strides = [1, 1]} : vector<8x49xf32> to vector<8x1xf32>
    %282 = vector.broadcast %281 : vector<8x1xf32> to vector<8x256xf32>
    %283 = arith.mulf %280, %282 : vector<8x256xf32>
    %284 = vector.extract_strided_slice %7 {offsets = [0, 99], sizes = [8, 256], strides = [1, 1]} : vector<8x512xf32> to vector<8x256xf32>
    %285 = vector.extract_strided_slice %8 {offsets = [0, 13], sizes = [8, 1], strides = [1, 1]} : vector<8x49xf32> to vector<8x1xf32>
    %286 = vector.broadcast %285 : vector<8x1xf32> to vector<8x256xf32>
    %287 = arith.mulf %284, %286 : vector<8x256xf32>
    %288 = arith.addf %283, %287 : vector<8x256xf32>
    %289 = vector.extract_strided_slice %7 {offsets = [0, 115], sizes = [8, 256], strides = [1, 1]} : vector<8x512xf32> to vector<8x256xf32>
    %290 = vector.extract_strided_slice %8 {offsets = [0, 20], sizes = [8, 1], strides = [1, 1]} : vector<8x49xf32> to vector<8x1xf32>
    %291 = vector.broadcast %290 : vector<8x1xf32> to vector<8x256xf32>
    %292 = arith.mulf %289, %291 : vector<8x256xf32>
    %293 = arith.addf %288, %292 : vector<8x256xf32>
    %294 = vector.extract_strided_slice %7 {offsets = [0, 131], sizes = [8, 256], strides = [1, 1]} : vector<8x512xf32> to vector<8x256xf32>
    %295 = vector.extract_strided_slice %8 {offsets = [0, 27], sizes = [8, 1], strides = [1, 1]} : vector<8x49xf32> to vector<8x1xf32>
    %296 = vector.broadcast %295 : vector<8x1xf32> to vector<8x256xf32>
    %297 = arith.mulf %294, %296 : vector<8x256xf32>
    %298 = arith.addf %293, %297 : vector<8x256xf32>
    %299 = vector.extract_strided_slice %7 {offsets = [0, 147], sizes = [8, 256], strides = [1, 1]} : vector<8x512xf32> to vector<8x256xf32>
    %300 = vector.extract_strided_slice %8 {offsets = [0, 34], sizes = [8, 1], strides = [1, 1]} : vector<8x49xf32> to vector<8x1xf32>
    %301 = vector.broadcast %300 : vector<8x1xf32> to vector<8x256xf32>
    %302 = arith.mulf %299, %301 : vector<8x256xf32>
    %303 = arith.addf %298, %302 : vector<8x256xf32>
    %304 = vector.extract_strided_slice %7 {offsets = [0, 163], sizes = [8, 256], strides = [1, 1]} : vector<8x512xf32> to vector<8x256xf32>
    %305 = vector.extract_strided_slice %8 {offsets = [0, 41], sizes = [8, 1], strides = [1, 1]} : vector<8x49xf32> to vector<8x1xf32>
    %306 = vector.broadcast %305 : vector<8x1xf32> to vector<8x256xf32>
    %307 = arith.mulf %304, %306 : vector<8x256xf32>
    %308 = arith.addf %303, %307 : vector<8x256xf32>
    %309 = vector.extract_strided_slice %7 {offsets = [0, 179], sizes = [8, 256], strides = [1, 1]} : vector<8x512xf32> to vector<8x256xf32>
    %310 = vector.extract_strided_slice %8 {offsets = [0, 48], sizes = [8, 1], strides = [1, 1]} : vector<8x49xf32> to vector<8x1xf32>
    %311 = vector.broadcast %310 : vector<8x1xf32> to vector<8x256xf32>
    %312 = arith.mulf %309, %311 : vector<8x256xf32>
    %313 = arith.addf %308, %312 : vector<8x256xf32>
    %c-3_i32 = arith.constant -3 : i32
    %314 = vector.broadcast %c-3_i32 : i32 to vector<1x256xi32>
    %315 = arith.cmpi sge, %25, %314 : vector<1x256xi32>
    %c13_i32 = arith.constant 13 : i32
    %316 = vector.broadcast %c13_i32 : i32 to vector<1x256xi32>
    %317 = arith.cmpi slt, %25, %316 : vector<1x256xi32>
    %318 = arith.andi %315, %317 : vector<1x256xi1>
    %cst_20 = arith.constant 0.000000e+00 : f32
    %319 = vector.shape_cast %318 : vector<1x256xi1> to vector<1x256xi1>
    %320 = vector.broadcast %319 : vector<1x256xi1> to vector<8x256xi1>
    %321 = vector.broadcast %cst_20 : f32 to vector<8x256xf32>
    %322 = arith.select %320, %313, %321 : vector<8x256xi1>, vector<8x256xf32>
    %323 = arith.addf %279, %322 : vector<8x256xf32>
    %c0_21 = arith.constant 0 : index
    %c0_22 = arith.constant 0 : index
    %324 = vector.load %arg3[%c0_21, %c0_22] : memref<8x1xf32, #tpu.memory_space<vmem>>, vector<8x1xf32>
    %325 = vector.broadcast %324 : vector<8x1xf32> to vector<8x256xf32>
    %326 = arith.mulf %323, %325 : vector<8x256xf32>
    %c0_23 = arith.constant 0 : index
    %c0_24 = arith.constant 0 : index
    %327 = vector.load %arg4[%c0_23, %c0_24] : memref<8x1xf32, #tpu.memory_space<vmem>>, vector<8x1xf32>
    %328 = vector.broadcast %327 : vector<8x1xf32> to vector<8x256xf32>
    %329 = arith.addf %326, %328 : vector<8x256xf32>
    %cst_25 = arith.constant 0.000000e+00 : f32
    %330 = vector.broadcast %cst_25 : f32 to vector<8x256xf32>
    %331 = arith.maximumf %329, %330 : vector<8x256xf32>
    %c0_26 = arith.constant 0 : index
    %c0_27 = arith.constant 0 : index
    %332 = vector.load %arg5[%c0_26, %c0_27] : memref<16x8xf32, #tpu.memory_space<vmem>>, vector<16x8xf32>
    %cst_28 = arith.constant dense<0.000000e+00> : vector<16x256xf32>
    %333 = tpu.matmul %332, %331, %cst_28 {dimension_numbers = #tpu.dot_dimension_numbers<[1], [0], [0], [1], [0, 0, 1, 1], [], []>} : vector<16x8xf32>, vector<8x256xf32>, vector<16x256xf32> -> vector<16x256xf32>
    %c0_29 = arith.constant 0 : index
    %c0_30 = arith.constant 0 : index
    %334 = vector.load %arg6[%c0_29, %c0_30] : memref<16x1xf32, #tpu.memory_space<vmem>>, vector<16x1xf32>
    %335 = vector.broadcast %334 : vector<16x1xf32> to vector<16x256xf32>
    %336 = arith.mulf %333, %335 : vector<16x256xf32>
    %c0_31 = arith.constant 0 : index
    %c0_32 = arith.constant 0 : index
    %337 = vector.load %arg7[%c0_31, %c0_32] : memref<16x1xf32, #tpu.memory_space<vmem>>, vector<16x1xf32>
    %338 = vector.broadcast %337 : vector<16x1xf32> to vector<16x256xf32>
    %339 = arith.addf %336, %338 : vector<16x256xf32>
    %c0_33 = arith.constant 0 : index
    %c0_34 = arith.constant 0 : index
    %c0_35 = arith.constant 0 : index
    %340 = vector.load %arg8[%c0_33, %c0_34, %c0_35] : memref<1x16x256xf32, #tpu.memory_space<vmem>>, vector<1x16x256xf32>
    %341 = vector.shape_cast %340 : vector<1x16x256xf32> to vector<16x256xf32>
    %342 = vector.shape_cast %339 : vector<16x256xf32> to vector<1x16x256xf32>
    tpu.vector_store %arg8[%c0_33, %c0_34, %c0_35], %342 {strides = array<i32>} : memref<1x16x256xf32, #tpu.memory_space<vmem>>, vector<1x16x256xf32>,
    return
  }
  func.func @transform_0(%arg0: i32) -> (i32, i32, i32) {
    %c0_i32 = arith.constant 0 : i32
    %c0_i32_0 = arith.constant 0 : i32
    %c0_i32_1 = arith.constant 0 : i32
    return %arg0, %c0_i32, %c0_i32_0 : i32, i32, i32
  }
  func.func @transform_1(%arg0: i32) -> (i32, i32) {
    %c0_i32 = arith.constant 0 : i32
    %c0_i32_0 = arith.constant 0 : i32
    %c0_i32_1 = arith.constant 0 : i32
    return %c0_i32, %c0_i32_0 : i32, i32
  }
  func.func @transform_2(%arg0: i32) -> (i32, i32) {
    %c0_i32 = arith.constant 0 : i32
    %c0_i32_0 = arith.constant 0 : i32
    %c0_i32_1 = arith.constant 0 : i32
    return %c0_i32, %c0_i32_0 : i32, i32
  }
  func.func @transform_3(%arg0: i32) -> (i32, i32) {
    %c0_i32 = arith.constant 0 : i32
    %c0_i32_0 = arith.constant 0 : i32
    %c0_i32_1 = arith.constant 0 : i32
    return %c0_i32, %c0_i32_0 : i32, i32
  }
  func.func @transform_4(%arg0: i32) -> (i32, i32) {
    %c0_i32 = arith.constant 0 : i32
    %c0_i32_0 = arith.constant 0 : i32
    %c0_i32_1 = arith.constant 0 : i32
    return %c0_i32, %c0_i32_0 : i32, i32
  }
  func.func @transform_5(%arg0: i32) -> (i32, i32) {
    %c0_i32 = arith.constant 0 : i32
    %c0_i32_0 = arith.constant 0 : i32
    %c0_i32_1 = arith.constant 0 : i32
    return %c0_i32, %c0_i32_0 : i32, i32
  }
  func.func @transform_6(%arg0: i32) -> (i32, i32) {
    %c0_i32 = arith.constant 0 : i32
    %c0_i32_0 = arith.constant 0 : i32
    %c0_i32_1 = arith.constant 0 : i32
    return %c0_i32, %c0_i32_0 : i32, i32
  }
  func.func @transform_7(%arg0: i32) -> (i32, i32, i32) {
    %c0_i32 = arith.constant 0 : i32
    %c0_i32_0 = arith.constant 0 : i32
    %c0_i32_1 = arith.constant 0 : i32
    return %arg0, %c0_i32, %c0_i32_0 : i32, i32, i32
  }
}

</mosaic_0001>

<bundles_post_ra>
// kernel: tpu_custom_call.1
= control target key start
LH: loop header
LB: loop body
LE: loop exit
PB: predicated region body
PF: predicated region fallthrough
CT: control target
= control target key end

     0   :  { %12 = vsyncpa [#allocation4], 0  ;;  %s3150_s0 = inlined_call_operand.vmem [shape: f32[2,8,256], index: 0, kind: input, shape index: {}]   ;;  %s3151_s1 = inlined_call_operand.vmem [shape: f32[8,49], index: 1, kind: input, shape index: {}]   ;;  %s3152_s2 = inlined_call_operand.vmem [shape: f32[8,1], index: 2, kind: input, shape index: {}]   ;;  %s3153_s3 = inlined_call_operand.vmem [shape: f32[8,1], index: 3, kind: input, shape index: {}]   ;;  %s3154_s4 = inlined_call_operand.vmem [shape: f32[16,8], index: 4, kind: input, shape index: {}]   ;;  %s3155_s5 = inlined_call_operand.vmem [shape: f32[16,1], index: 5, kind: input, shape index: {}]   ;;  %s3156_s6 = inlined_call_operand.vmem [shape: f32[16,1], index: 6, kind: input, shape index: {}]   ;;  %s3157_s7 = inlined_call_operand.hbm [shape: f32[2,16,256], index: 7, kind: output, shape index: {}]  }
   0x1   :  { %14 = vsyncpa [#allocation4 + $0x1], 0  ;;  %s2111_s24 = smov 0   ;;  %s2113_s25 = smov 0  }
   0x2   :  { %s2115_s26 = smov 0   ;;  %s2117_s27 = smov 0  }
   0x3 LB: > { %s2132_s28 = sadd.s32 4294967295, %s2004_s27   ;;  %s1771_s29 = sadd.s32 4294967294, %s2004_s27   ;;  %s2004_s27 = sphi %s2117_s27, %s3175_s27   ;;  %s2000_s26 = sphi %s2115_s26, %s3174_s26   ;;  %s1996_s25 = sphi %s2113_s25, %s3173_s25   ;;  %s1992_s24 = sphi %s2111_s24, %s3172_s24  }
   0x4   : > { %s2136_s30 = sadd.s32 1, %s2004_s27   ;;  %s179_s8 = sadd.s32 1, %s2000_s26 }
   0x5   : > { %s176_s9 = ssub.s32 %s2004_s27, %s2136_s30  ;;  %p189_p0 = scmp.ne.s32.totalorder %s2000_s26, %s1996_s25 }
   0x6   : > { %p177_p1 = scmp.eq.s32.totalorder %s176_s9, 0  ;;  %p190_p2 = scmp.eq.s32.totalorder %s2132_s28, 1 }
   0x7   : > { %p195_p3 = scmp.ne.s32.totalorder %s1996_s25, %s1992_s24  ;;  %p196_p4 = scmp.eq.s32.totalorder %s1771_s29, 1 }
   0x8   : > { %s2147_s10 = scalar_select %p177_p1, %s2000_s26, %s179_s8  }
   0x9   : > { %p2149_p5 = por %p190_p2, %p189_p0  ;;  %p2153_p6 = por %p196_p4, %p195_p3 }
   0xa   : > { %p1774_p7 = scmp.ge.s32.totalorder %s2004_s27, 1  ;;  %p240_p8 = scmp.lt.s32.totalorder %s2004_s27, 3 }
   0xc   : > { %p241_p9 = pnand %p1774_p7, %p240_p8 }
   0xe   : > { %244 = sbr.rel (%p241_p9) target bundleno = 969 (0x3c9), region = 48 }
  0x13   : > { %v2162_v0 = vld [vmem:[%s3151_s1] sm:$0xff]  ;;  %v2006_v1 = vmov 7   ;;  %v2007_v2 = vmov 21   ;;  %v2008_v3 = vmov 14   ;;  %v2009_v4 = vmov 28   ;;  %p272_p10 = scmp.lt.s32.totalorder %s2132_s28, 1 }
  0x14   : > { %1892 = vset.pattern.permute.xlu0 %v2006_v1  ;;  %1894 = vset.pattern.permute.xlu1 %v2007_v2  ;;  %v2010_v5 = vmov 35   ;;  %v2011_v6 = vmov 1   ;;  %v2012_v7 = vmov 42   ;;  %v2013_v8 = vmov 15   ;;  %s2036_s20 = smov 112   ;;  %s2037_s21 = smov 96  }
  0x15   : > { %324 = vperm.xlu0 %1892, %v2162_v0   ;;  %374 = vperm.xlu1 %1894, %v2162_v0   ;;  %v2014_v9 = vmov 8   ;;  %v2015_v10 = vmov 9   ;;  %v2016_v11 = vmov 22   ;;  %v2017_v12 = vmov 29   ;;  %s273_s15 = scalar_select %p272_p10, %s2132_s28, 1 }
  0x16   : > { %v2018_v13 = vmov 16   ;;  %v2019_v14 = vmov 17   ;;  %v2020_v15 = vmov 10   ;;  %v2021_v16 = vmov 18   ;;  %s2038_s22 = smov 80   ;;  %s2039_s23 = smov 64  }
  0x17   : > { %v2022_v17 = vmov 23   ;;  %v2023_v18 = vmov 43   ;;  %v2024_v19 = vmov 11   ;;  %v2025_v20 = vmov 19   ;;  %s1785_s16 = sshll.u32 %s273_s15, 4  ;;  %s2040_s29 = smov 48  }
  0x18   : > { %v2026_v21 = vmov 36   ;;  %v2027_v22 = vmov 44   ;;  %v2028_v23 = vmov 30   ;;  %v2029_v24 = vmov 12   ;;  %s2197_s19 = scalar_lea.vmem %s3150_s0, %s1785_s16  ;;  %s2041_s8 = smov 32  }
  0x19   : > { %1893 = vset.pattern.permute.xlu0 %v2008_v3  ;;  %1895 = vset.pattern.permute.xlu1 %v2009_v4  ;;  %v2030_v25 = vmov 24   ;;  %v2031_v26 = vmov 37   ;;  %v2032_v27 = vmov 25   ;;  %v2033_v28 = vmov 13   ;;  %v2200_v33 = vld [vmem:[%s2197_s19] sm:$0xff]  ;;  %v2205_v36 = vld [vmem:[%s2197_s19 + $0x8] sm:$0xff] }
  0x1a   : > { %349 = vperm.xlu0 %1893, %v2162_v0   ;;  %399 = vperm.xlu1 %1895, %v2162_v0   ;;  %v2034_v29 = vmov 31   ;;  %v2035_v30 = vmov 32   ;;  %vm339_vm0 = vcmask 916480   ;;  %vm364_vm1 = vcmask 785408   ;;  %s2061_s9 = smov 51   ;;  %s2062_s13 = smov 50  }
  0x1b   : > { %vm389_vm2 = vcmask 654336   ;;  %vm414_vm3 = vcmask 523264   ;;  %vm439_vm4 = vcmask 392192   ;;  %vm464_vm5 = vcmask 261120   ;;  %s2063_s14 = smov 49   ;;  %s2064_s15 = smov 47  }
  0x1c   : > { %vm492_vm6 = vcmask 416768   ;;  %s2065_s16 = smov 46   ;;  %vm669_vm7 = vcmask 408576   ;;  %vm848_vm8 = vcmask 400384   ;;  %vm1188_vm15 = vcmask 384000  }
  0x1e   : > { %1896 = vset.pattern.permute.xlu1 %v2010_v5  ;;  %1898 = vset.pattern.permute.xlu0 %v2011_v6  ;;  %v2042_v6 = vmov 20  }
  0x1f   : > { %424 = vperm.xlu1 %1896, %v2162_v0   ;;  %500 = vperm.xlu0 %1898, %v2162_v0  }
  0x23   : > { %1897 = vset.pattern.permute.xlu1 %v2012_v7  ;;  %1900 = vset.pattern.permute.xlu0 %v2013_v8  ;;  %v2043_v8 = vmov 26  }
  0x24   : > { %449 = vperm.xlu1 %1897, %v2162_v0   ;;  %531 = vperm.xlu0 %1900, %v2162_v0  }
  0x28   : > { %1899 = vset.pattern.permute.xlu1 %v2014_v9  ;;  %1902 = vset.pattern.permute.xlu0 %v2015_v10  ;;  %v2044_v9 = vmov 33  }
  0x29   : > { %507 = vperm.xlu1 %1899, %v2162_v0   ;;  %686 = vperm.xlu0 %1902, %v2162_v0  }
  0x2d   : > { %1901 = vset.pattern.permute.xlu1 %v2016_v11  ;;  %1905 = vset.pattern.permute.xlu0 %v2017_v12  ;;  %v2045_v11 = vmov 38   ;;  %v2046_v12 = vmov 46  }
  0x2e   : > { %555 = vperm.xlu1 %1901, %v2162_v0   ;;  %579 = vperm.xlu0 %1905, %v2162_v0  }
  0x32   : > { %1903 = vset.pattern.permute.xlu1 %v2018_v13  ;;  %1908 = vset.pattern.permute.xlu0 %v2019_v14  ;;  %v2047_v13 = vmov 39  }
  0x33   : > { %710 = vperm.xlu1 %1903, %v2162_v0   ;;  %889 = vperm.xlu0 %1908, %v2162_v0  }
  0x37   : > { %1904 = vset.pattern.permute.xlu1 %v2020_v15  ;;  %1911 = vset.pattern.permute.xlu0 %v2021_v16  ;;  %v2048_v15 = vmov 47   ;;  %v2049_v16 = vmov 27  }
  0x38   : > { %865 = vperm.xlu1 %1904, %v2162_v0   ;;  %1050 = vperm.xlu0 %1911, %v2162_v0  }
  0x3c   : > { %1906 = vset.pattern.permute.xlu1 %v2022_v17  ;;  %1914 = vset.pattern.permute.xlu0 %v2023_v18 }
  0x3d   : > { %734 = vperm.xlu1 %1906, %v2162_v0   ;;  %627 = vperm.xlu0 %1914, %v2162_v0  }
  0x41   : > { %1907 = vset.pattern.permute.xlu1 %v2024_v19  ;;  %1917 = vset.pattern.permute.xlu0 %v2025_v20  ;;  %v2050_v19 = vmov 2  }
  0x42   : > { %1026 = vperm.xlu1 %1907, %v2162_v0   ;;  %1229 = vperm.xlu0 %1917, %v2162_v0  }
  0x46   : > { %1909 = vset.pattern.permute.xlu1 %v2026_v21  ;;  %1920 = vset.pattern.permute.xlu0 %v2027_v22  ;;  %v2051_v21 = vmov 45  }
  0x47   : > { %603 = vperm.xlu1 %1909, %v2162_v0  }
  0x4b   : > { %1910 = vset.pattern.permute.xlu1 %v2028_v23  ;;  %v2052_v23 = vmov 5  }
  0x4c   : > { %758 = vperm.xlu1 %1910, %v2162_v0  }
  0x50   : > { %1912 = vset.pattern.permute.xlu1 %v2029_v24  ;;  %v2053_v24 = vmov 40  }
  0x51   : > { %1205 = vperm.xlu1 %1912, %v2162_v0  }
  0x55   : > { %1913 = vset.pattern.permute.xlu1 %v2030_v25 }
  0x56   : > { %913 = vperm.xlu1 %1913, %v2162_v0  }
  0x5a   : > { %1915 = vset.pattern.permute.xlu1 %v2031_v26  ;;  %v2054_v26 = vmov 0  }
  0x5b   : > { %782 = vperm.xlu1 %1915, %v2162_v0  }
  0x5f   : > { %1916 = vset.pattern.permute.xlu1 %v2032_v27  ;;  %v2055_v27 = vmov 34  }
  0x60   : > { %1074 = vperm.xlu1 %1916, %v2162_v0  }
  0x64   : > { %1918 = vset.pattern.permute.xlu1 %v2033_v28 }
  0x65   : > { %1384 = vperm.xlu1 %1918, %v2162_v0  }
  0x69   : > { %1919 = vset.pattern.permute.xlu1 %v2034_v29 }
  0x6a   : > { %932 = vperm.xlu1 %1919, %v2162_v0  }
  0x6e   : > { %1921 = vset.pattern.permute.xlu1 %v2035_v30 }
  0x90   : > { %v325_v31 = vpop.permute.xlu0 %324  ;;  %v375_v37 = vpop.permute.xlu1 %374 }
  0x91   : > { %v327_v32 = vmul.f32 0.0, %v325_v31  ;;  %v328_v35 = vmul.f32 %v325_v31, %v2200_v33  ;;  %v377_v39 = vmul.f32 0.0, %v375_v37  ;;  %v329_v40 = vmul.f32 %v325_v31, %v2205_v36 }
  0x92   : > { %v379_v43 = vmul.f32 %v375_v37, %v2205_v36  ;;  %v378_v46 = vmul.f32 %v375_v37, %v2200_v33  ;;  %v2056_v31 = vmov 41  }
  0x93   : > { %333 = vrot.lane.b32.xlu1 %v327_v32, %s2036_s20 }
  0x95   : > { %v350_v34 = vpop.permute.xlu0 %349  ;;  %v400_v42 = vpop.permute.xlu1 %399 }
  0x96   : > { %v354_v38 = vmul.f32 %v350_v34, %v2205_v36  ;;  %v352_v41 = vmul.f32 0.0, %v350_v34  ;;  %v402_v44 = vmul.f32 %v400_v42, %v2200_v33  ;;  %v353_v45 = vmul.f32 %v350_v34, %v2200_v33 }
  0x97   : > { %335 = vrot.lane.b32.xlu1 %v328_v35, %s2036_s20  ;;  %v404_v48 = vmul.f32 0.0, %v400_v42  ;;  %v403_v50 = vmul.f32 %v400_v42, %v2205_v36  ;;  %v2057_v35 = vmov 48  }
  0x98   : > { %362 = vrot.lane.b32.xlu0 %v354_v38, %s2037_s21 }
  0x9a   : > { %v425_v47 = vpop.permute.xlu1 %424  ;;  %v2232_v57 = vpop.permute.xlu0 %500 }
  0x9b   : > { %337 = vrot.lane.b32.xlu1 %v329_v40, %s2036_s20  ;;  %v427_v49 = vmul.f32 %v425_v47, %v2200_v33  ;;  %v428_v52 = vmul.f32 %v425_v47, %v2205_v36  ;;  %v429_v53 = vmul.f32 0.0, %v425_v47 }
  0x9c   : > { %383 = vrot.lane.b32.xlu0 %v377_v39, %s2038_s22  ;;  %v2058_v39 = vmov 3  }
  0x9f   : > { %358 = vrot.lane.b32.xlu1 %v352_v41, %s2037_s21  ;;  %v450_v51 = vpop.permute.xlu1 %449  ;;  %v532_v62 = vpop.permute.xlu0 %531 }
  0xa0   : > { %387 = vrot.lane.b32.xlu0 %v379_v43, %s2038_s22  ;;  %v453_v54 = vmul.f32 %v450_v51, %v2205_v36  ;;  %v452_v56 = vmul.f32 %v450_v51, %v2200_v33  ;;  %v454_v59 = vmul.f32 0.0, %v450_v51  ;;  %v534_v1 = vmul.f32 0.0, %v532_v62 }
  0xa1   : > { %v536_v2 = vmul.f32 %v532_v62, %v2205_v36  ;;  %v535_v4 = vmul.f32 %v532_v62, %v2200_v33 }
  0xa3   : > { %360 = vrot.lane.b32.xlu1 %v353_v45, %s2037_s21 }
  0xa4   : > { %408 = vrot.lane.b32.xlu0 %v402_v44, %s2039_s23  ;;  %v508_v55 = vpop.permute.xlu1 %507  ;;  %v2268_v17 = vpop.permute.xlu0 %686  ;;  %v2059_v44 = vmov 4  }
  0xa5   : > { %v510_v58 = vmul.f32 0.0, %v508_v55  ;;  %v512_v60 = vmul.f32 %v508_v55, %v2205_v36  ;;  %v511_v63 = vmul.f32 %v508_v55, %v2200_v33  ;;  %v690_v20 = vmul.f32 %v2268_v17, %v2200_v33 }
  0xa7   : > { %385 = vrot.lane.b32.xlu1 %v378_v46, %s2038_s22 }
  0xa8   : > { %412 = vrot.lane.b32.xlu0 %v404_v48, %s2039_s23  ;;  %v691_v48 = vmul.f32 %v2268_v17, %v2205_v36 }
  0xa9   : > { %v2238_v61 = vpop.permute.xlu1 %555  ;;  %v2289_v29 = vpop.permute.xlu0 %579 }
  0xaa   : > { %v560_v28 = vmul.f32 %v2238_v61, %v2205_v36  ;;  %v558_v38 = vmul.f32 0.0, %v2238_v61  ;;  %v582_v43 = vmul.f32 %v2289_v29, %v2200_v33  ;;  %v584_v47 = vmul.f32 0.0, %v2289_v29 }
  0xab   : > { %410 = vrot.lane.b32.xlu1 %v403_v50, %s2039_s23  ;;  %v559_v55 = vmul.f32 %v2238_v61, %v2200_v33 }
  0xac   : > { %433 = vrot.lane.b32.xlu0 %v427_v49, %s2040_s29  ;;  %v2060_v49 = vmov 6  }
  0xae   : > { %v2245_v3 = vpop.permute.xlu1 %710  ;;  %v2298_v34 = vpop.permute.xlu0 %889 }
  0xaf   : > { %435 = vrot.lane.b32.xlu1 %v428_v52, %s2040_s29  ;;  %v715_v32 = vmul.f32 %v2245_v3, %v2205_v36  ;;  %v689_v52 = vmul.f32 0.0, %v2268_v17  ;;  %v894_v61 = vmul.f32 %v2298_v34, %v2205_v36 }
  0xb0   : > { %437 = vrot.lane.b32.xlu0 %v429_v53, %s2040_s29 }
  0xb3   : > { %460 = vrot.lane.b32.xlu1 %v453_v54, %s2041_s8  ;;  %v2251_v5 = vpop.permute.xlu1 %865  ;;  %v2307_v41 = vpop.permute.xlu0 %1050 }
  0xb4   : > { %458 = vrot.lane.b32.xlu0 %v452_v56, %s2041_s8  ;;  %v869_v40 = vmul.f32 %v2251_v5, %v2200_v33 }
  0xb7   : > { %516 = vrot.lane.b32.xlu1 %v510_v58, %s2036_s20 }
  0xb8   : > { %462 = vrot.lane.b32.xlu0 %v454_v59, %s2041_s8  ;;  %v2256_v7 = vpop.permute.xlu1 %734  ;;  %v2317_v45 = vpop.permute.xlu0 %627 }
  0xb9   : > { %v739_v51 = vmul.f32 %v2256_v7, %v2205_v36  ;;  %v737_v59 = vmul.f32 0.0, %v2256_v7 }
  0xbb   : > { %520 = vrot.lane.b32.xlu1 %v512_v60, %s2036_s20  ;;  %v714_v60 = vmul.f32 %v2245_v3, %v2200_v33 }
  0xbc   : > { %518 = vrot.lane.b32.xlu0 %v511_v63, %s2036_s20 }
  0xbd   : > { %v2260_v10 = vpop.permute.xlu1 %1026  ;;  %v2326_v50 = vpop.permute.xlu0 %1229 }
  0xbe   : > { %v1030_v54 = vmul.f32 %v2260_v10, %v2200_v33 }
  0xbf   : > { %540 = vrot.lane.b32.xlu1 %v534_v1, %s2037_s21 }
  0xc0   : > { %544 = vrot.lane.b32.xlu0 %v536_v2, %s2037_s21 }
  0xc2   : > { %v2264_v14 = vpop.permute.xlu1 %603 }
  0xc3   : > { %542 = vrot.lane.b32.xlu1 %v535_v4, %s2037_s21  ;;  %v606_v4 = vmul.f32 %v2264_v14, %v2200_v33 }
  0xc4   : > { %806 = vperm.xlu0 %1920, %v2162_v0  }
  0xc7   : > { %1098 = vperm.xlu1 %1921, %v2162_v0   ;;  %v2271_v18 = vpop.permute.xlu1 %758 }
  0xc8   : > { %1923 = vset.pattern.permute.xlu0 %v2042_v6  ;;  %v713_v6 = vmul.f32 0.0, %v2245_v3 }
  0xc9   : > { %1408 = vperm.xlu0 %1923, %v2162_v0  }
  0xcb   : > { %1922 = vset.pattern.permute.xlu1 %v2043_v8 }
  0xcc   : > { %1253 = vperm.xlu1 %1922, %v2162_v0   ;;  %v2278_v22 = vpop.permute.xlu1 %1205 }
  0xcd   : > { %1926 = vset.pattern.permute.xlu0 %v2044_v9 }
  0xce   : > { %1277 = vperm.xlu0 %1926, %v2162_v0  }
  0xd0   : > { %1924 = vset.pattern.permute.xlu1 %v2045_v11  ;;  %v870_v11 = vmul.f32 %v2251_v5, %v2205_v36 }
  0xd1   : > { %956 = vperm.xlu1 %1924, %v2162_v0   ;;  %v2282_v25 = vpop.permute.xlu1 %913 }
  0xd2   : > { %1929 = vset.pattern.permute.xlu0 %v2046_v12 }
  0xd3   : > { %1146 = vperm.xlu0 %1929, %v2162_v0  }
  0xd5   : > { %1925 = vset.pattern.permute.xlu1 %v2047_v13  ;;  %v583_v13 = vmul.f32 %v2289_v29, %v2205_v36 }
  0xd6   : > { %1122 = vperm.xlu1 %1925, %v2162_v0   ;;  %v2291_v30 = vpop.permute.xlu1 %782 }
  0xd7   : > { %1932 = vset.pattern.permute.xlu0 %v2048_v15  ;;  %v762_v15 = vmul.f32 %v2271_v18, %v2205_v36 }
  0xd8   : > { %1325 = vperm.xlu0 %1932, %v2162_v0  }
  0xda   : > { %1927 = vset.pattern.permute.xlu1 %v2049_v16 }
  0xdb   : > { %1432 = vperm.xlu1 %1927, %v2162_v0   ;;  %v2300_v37 = vpop.permute.xlu1 %1074 }
  0xdc   : > { %1935 = vset.pattern.permute.xlu0 %v2050_v19  ;;  %v738_v19 = vmul.f32 %v2256_v7, %v2200_v33  ;;  %v1031_v7 = vmul.f32 %v2260_v10, %v2205_v36 }
  0xdd   : > { %679 = vperm.xlu0 %1935, %v2162_v0  }
  0xdf   : > { %1928 = vset.pattern.permute.xlu1 %v2051_v21 }
  0xe0   : > { %980 = vperm.xlu1 %1928, %v2162_v0   ;;  %v2310_v42 = vpop.permute.xlu1 %1384 }
  0xe1   : > { %697 = vrot.lane.b32.xlu0 %v690_v20, %s2036_s20  ;;  %v892_v20 = vmul.f32 0.0, %v2298_v34 }
  0xe2   : > { %1938 = vset.pattern.permute.xlu0 %v2052_v23 }
  0xe4   : > { %1930 = vset.pattern.permute.xlu1 %v2053_v24  ;;  %v868_v24 = vmul.f32 0.0, %v2251_v5  ;;  %v917_v5 = vmul.f32 %v2282_v25, %v2205_v36 }
  0xe5   : > { %1198 = vperm.xlu0 %1938, %v2162_v0   ;;  %1301 = vperm.xlu1 %1930, %v2162_v0   ;;  %v2319_v46 = vpop.permute.xlu1 %932 }
  0xe9   : > { %1939 = vset.pattern.permute.xlu0 %v2054_v26  ;;  %1931 = vset.pattern.permute.xlu1 %v2055_v27 }
  0xea   : > { %317 = vperm.xlu0 %1939, %v2162_v0   ;;  %1456 = vperm.xlu1 %1931, %v2162_v0  }
  0xee   : > { %568 = vrot.lane.b32.xlu0 %v560_v28, %s2038_s22  ;;  %1933 = vset.pattern.permute.xlu1 %v2056_v31  ;;  %v1210_v28 = vmul.f32 %v2278_v22, %v2205_v36  ;;  %v893_v31 = vmul.f32 %v2298_v34, %v2200_v33  ;;  %v761_v34 = vmul.f32 %v2271_v18, %v2200_v33 }
  0xef   : > { %1480 = vperm.xlu1 %1933, %v2162_v0  }
  0xf2   : > { %723 = vrot.lane.b32.xlu0 %v715_v32, %s2037_s21 }
  0xf3   : > { %1934 = vset.pattern.permute.xlu1 %v2057_v35 }
  0xf4   : > { %1504 = vperm.xlu1 %1934, %v2162_v0  }
  0xf6   : > { %564 = vrot.lane.b32.xlu0 %v558_v38, %s2038_s22  ;;  %v1029_v38 = vmul.f32 0.0, %v2260_v10  ;;  %v763_v10 = vmul.f32 0.0, %v2271_v18 }
  0xf8   : > { %1936 = vset.pattern.permute.xlu1 %v2058_v39 }
  0xf9   : > { %858 = vperm.xlu1 %1936, %v2162_v0  }
  0xfa   : > { %876 = vrot.lane.b32.xlu0 %v869_v40, %s2036_s20  ;;  %v607_v40 = vmul.f32 %v2264_v14, %v2205_v36 }
  0xfd   : > { %1937 = vset.pattern.permute.xlu1 %v2059_v44 }
  0xfe   : > { %588 = vrot.lane.b32.xlu0 %v582_v43, %s2039_s23  ;;  %1019 = vperm.xlu1 %1937, %v2162_v0  }
 0x102   : > { %592 = vrot.lane.b32.xlu0 %v584_v47, %s2039_s23  ;;  %699 = vrot.lane.b32.xlu1 %v691_v48, %s2036_s20 }
 0x103   : > { %1940 = vset.pattern.permute.xlu1 %v2060_v49  ;;  %v1054_v49 = vmul.f32 %v2307_v41, %v2200_v33 }
 0x105   : > { %v2331_v53 = vpop.permute.xlu1 %333 }
 0x106   : > { %747 = vrot.lane.b32.xlu0 %v739_v51, %s2038_s22  ;;  %695 = vrot.lane.b32.xlu1 %v689_v52, %s2036_s20  ;;  %v1209_v52 = vmul.f32 %v2278_v22, %v2200_v33 }
 0x109   : > { %v2339_v56 = vpop.permute.xlu1 %335 }
 0x10a   : > { %v2341_v58 = vpop.permute.xlu0 %362  ;;  %1037 = vrot.lane.b32.xlu0 %v1030_v54, %s2036_s20  ;;  %566 = vrot.lane.b32.xlu1 %v559_v55, %s2038_s22  ;;  %v916_v55 = vmul.f32 %v2282_v25, %v2200_v33 }
 0x10d   : > { %v2348_v62 = vpop.permute.xlu1 %337 }
 0x10e   : > { %v2350_v63 = vpop.permute.xlu0 %383  ;;  %743 = vrot.lane.b32.xlu0 %v737_v59, %s2038_s22  ;;  %721 = vrot.lane.b32.xlu1 %v714_v60, %s2037_s21  ;;  %v1053_v60 = vmul.f32 0.0, %v2307_v41 }
 0x111   : > { %v2356_v1 = vpop.permute.xlu1 %358 }
 0x112   : > { %v2358_v2 = vpop.permute.xlu0 %387  ;;  %902 = vrot.lane.b32.xlu0 %v894_v61, %s2037_s21  ;;  %1377 = vperm.xlu1 %1940, %v2162_v0   ;;  %v608_v0 = vmul.f32 0.0, %v2264_v14 }
 0x115   : > { %v2365_v8 = vpop.permute.xlu1 %360 }
 0x116   : > { %612 = vrot.lane.b32.xlu0 %v606_v4, %s2040_s29  ;;  %v2368_v9 = vpop.permute.xlu0 %408  ;;  %719 = vrot.lane.b32.xlu1 %v713_v6, %s2037_s21 }
 0x117   : > { %1941 = vset.pattern.permute.xlu1 %v2054_v26  ;;  %v1055_v26 = vmul.f32 %v2307_v41, %v2205_v36 }
 0x119   : > { %v2375_v12 = vpop.permute.xlu1 %385 }
 0x11a   : > { %616 = vrot.lane.b32.xlu0 %v608_v0, %s2040_s29  ;;  %v2378_v3 = vpop.permute.xlu0 %412  ;;  %878 = vrot.lane.b32.xlu1 %v870_v11, %s2036_s20 }
 0x11d   : > { %v2385_v16 = vpop.permute.xlu1 %410 }
 0x11e   : > { %769 = vrot.lane.b32.xlu0 %v762_v15, %s2039_s23  ;;  %v2388_v17 = vpop.permute.xlu0 %433  ;;  %590 = vrot.lane.b32.xlu1 %v583_v13, %s2039_s23 }
 0x121   : > { %v2394_v21 = vpop.permute.xlu1 %435 }
 0x122   : > { %898 = vrot.lane.b32.xlu0 %v892_v20, %s2037_s21  ;;  %745 = vrot.lane.b32.xlu1 %v738_v19, %s2038_s22  ;;  %v2398_v23 = vpop.permute.xlu0 %437 }
 0x125   : > { %v2403_v27 = vpop.permute.xlu1 %460 }
 0x126   : > { %1063 = vrot.lane.b32.xlu0 %v1055_v26, %s2037_s21  ;;  %874 = vrot.lane.b32.xlu1 %v868_v24, %s2036_s20  ;;  %v2411_v29 = vpop.permute.xlu0 %458 }
 0x129   : > { %v2419_v32 = vpop.permute.xlu1 %516 }
 0x12a   : > { %1218 = vrot.lane.b32.xlu0 %v1210_v28, %s2036_s20  ;;  %1039 = vrot.lane.b32.xlu1 %v1031_v7, %s2036_s20  ;;  %v2423_v35 = vpop.permute.xlu0 %462 }
 0x12d   : > { %v2426_v39 = vpop.permute.xlu1 %520 }
 0x12e   : > { %922 = vrot.lane.b32.xlu0 %v917_v5, %s2038_s22  ;;  %900 = vrot.lane.b32.xlu1 %v893_v31, %s2037_s21  ;;  %v2431_v43 = vpop.permute.xlu0 %518  ;;  %v340_v5 = vsel %vm339_vm0, %v2331_v53, %v2339_v56  ;;  %v341_v31 = vsel %vm339_vm0, %v2339_v56, %v2348_v62 }
 0x131   : > { %v2436_v44 = vpop.permute.xlu1 %540 }
 0x132   : > { %1035 = vrot.lane.b32.xlu1 %v1029_v38, %s2036_s20  ;;  %v2439_v47 = vpop.permute.xlu0 %544 }
 0x135   : > { %v2442_v48 = vpop.permute.xlu1 %542 }
 0x136   : > { %614 = vrot.lane.b32.xlu1 %v607_v40, %s2040_s29 }
 0x13a   : > { %767 = vrot.lane.b32.xlu1 %v761_v34, %s2039_s23 }
 0x13e   : > { %771 = vrot.lane.b32.xlu1 %v763_v10, %s2039_s23  ;;  %v365_v10 = vsel %vm364_vm1, %v2356_v1, %v2365_v8  ;;  %v391_v1 = vsel %vm389_vm2, %v2375_v12, %v2358_v2 }
 0x13f   : > { %v2445_v14 = vpop.permute.xlu0 %806 }
 0x142   : > { %1061 = vrot.lane.b32.xlu1 %v1054_v49, %s2037_s21  ;;  %v2450_v51 = vpop.permute.xlu1 %1098  ;;  %v366_v49 = vsel %vm364_vm1, %v2365_v8, %v2341_v58 }
 0x144   : > { %v2454_v54 = vpop.permute.xlu0 %1408 }
 0x146   : > { %1216 = vrot.lane.b32.xlu1 %v1209_v52, %s2036_s20 }
 0x147   : > { %v2457_v18 = vpop.permute.xlu1 %1253 }
 0x149   : > { %v2461_v59 = vpop.permute.xlu0 %1277 }
 0x14a   : > { %920 = vrot.lane.b32.xlu1 %v916_v55, %s2038_s22 }
 0x14c   : > { %v2465_v61 = vpop.permute.xlu1 %956 }
 0x14e   : > { %v2467_v4 = vpop.permute.xlu0 %1146  ;;  %1059 = vrot.lane.b32.xlu1 %v1053_v60, %s2037_s21 }
 0x151   : > { %v2470_v6 = vpop.permute.xlu1 %1122 }
 0x153   : > { %v2472_v11 = vpop.permute.xlu0 %1325 }
 0x156   : > { %v2474_v0 = vpop.permute.xlu1 %1432 }
 0x158   : > { %v2476_v13 = vpop.permute.xlu0 %679 }
 0x15b   : > { %v2478_v25 = vpop.permute.xlu1 %980 }
 0x15c   : > { %v2480_v15 = vpop.permute.xlu0 %697 }
 0x160   : > { %v2482_v19 = vpop.permute.xlu0 %1198  ;;  %v2484_v41 = vpop.permute.xlu1 %1301 }
 0x165   : > { %v318_v20 = vpop.permute.xlu0 %317  ;;  %v2486_v24 = vpop.permute.xlu1 %1456 }
 0x166   : > { %v320_v26 = vmul.f32 0.0, %v318_v20  ;;  %v321_v7 = vmul.f32 %v318_v20, %v2200_v33  ;;  %v322_v28 = vmul.f32 %v318_v20, %v2205_v36 }
 0x168   : > { %v345_v38 = vadd.f32 %v340_v5, %v320_v26  ;;  %v346_v40 = vadd.f32 %v341_v31, %v321_v7  ;;  %v347_v34 = vadd.f32 %v2348_v62, %v322_v28  ;;  %v390_v62 = vsel %vm389_vm2, %v2350_v63, %v2375_v12 }
 0x169   : > { %v2503_v52 = vpop.permute.xlu0 %568  ;;  %v415_v7 = vsel %vm414_vm3, %v2368_v9, %v2385_v16  ;;  %v441_v12 = vsel %vm439_vm4, %v2394_v21, %v2398_v23 }
 0x16a   : > { %v370_v53 = vadd.f32 %v365_v10, %v345_v38  ;;  %v371_v55 = vadd.f32 %v366_v49, %v346_v40  ;;  %v372_v56 = vadd.f32 %v2341_v58, %v347_v34  ;;  %v2506_v60 = vpop.permute.xlu1 %1480  ;;  %v416_v58 = vsel %vm414_vm3, %v2385_v16, %v2378_v3 }
 0x16b   : > { %v440_v38 = vsel %vm439_vm4, %v2388_v17, %v2394_v21  ;;  %v466_v3 = vsel %vm464_vm5, %v2403_v27, %v2423_v35  ;;  %v1208_v35 = vmul.f32 0.0, %v2278_v22  ;;  %v632_v22 = vmul.f32 0.0, %v2317_v45 }
 0x16c   : > { %v395_v20 = vadd.f32 %v390_v62, %v370_v53  ;;  %v397_v8 = vadd.f32 %v2358_v2, %v372_v56  ;;  %v396_v26 = vadd.f32 %v391_v1, %v371_v55  ;;  %v785_v1 = vmul.f32 %v2291_v30, %v2200_v33 }
 0x16d   : > { %v2521_v28 = vpop.permute.xlu0 %723 }
 0x16e   : > { %v422_v63 = vadd.f32 %v416_v58, %v397_v8  ;;  %v421_v5 = vadd.f32 %v415_v7, %v396_v26  ;;  %v420_v31 = vadd.f32 %v2368_v9, %v395_v20  ;;  %v465_v9 = vsel %vm464_vm5, %v2411_v29, %v2403_v27 }
 0x16f   : > { %v2527_v2 = vpop.permute.xlu1 %1504  ;;  %v631_v27 = vmul.f32 %v2317_v45, %v2205_v36  ;;  %v786_v8 = vmul.f32 %v2291_v30, %v2205_v36  ;;  %v787_v26 = vmul.f32 0.0, %v2291_v30  ;;  %v1077_v58 = vmul.f32 %v2300_v37, %v2200_v33 }
 0x170   : > { %v447_v40 = vadd.f32 %v441_v12, %v422_v63  ;;  %v446_v34 = vadd.f32 %v440_v38, %v421_v5  ;;  %v445_v10 = vadd.f32 %v2388_v17, %v420_v31  ;;  %v630_v17 = vmul.f32 %v2317_v45, %v2200_v33 }
 0x171   : > { %v2535_v16 = vpop.permute.xlu0 %564  ;;  %v1078_v63 = vmul.f32 %v2300_v37, %v2205_v36  ;;  %v1079_v31 = vmul.f32 0.0, %v2300_v37  ;;  %v1233_v12 = vmul.f32 %v2326_v50, %v2200_v33 }
 0x172   : > { %v472_v23 = vadd.f32 %v466_v3, %v447_v40  ;;  %v471_v49 = vadd.f32 %v465_v9, %v446_v34  ;;  %v470_v21 = vadd.f32 %v2411_v29, %v445_v10  ;;  %v1234_v40 = vmul.f32 %v2326_v50, %v2205_v36 }
 0x173   : > { %v1388_v3 = vmul.f32 %v2310_v42, %v2200_v33  ;;  %v1389_v9 = vmul.f32 %v2310_v42, %v2205_v36 }
 0x174   : > { %490 = vrot.lane.b32.xlu1 %v472_v23, %s2061_s9  ;;  %v2541_v53 = vpop.permute.xlu1 %858  ;;  %488 = vrot.lane.b32.xlu0 %v471_v49, %s2061_s9  ;;  %v935_v23 = vmul.f32 %v2319_v46, %v2200_v33 }
 0x175   : > { %3164 = vst [vmem:[#allocation6_spill] sm:$0xff] %v2541_v53  ;;  %v2544_v55 = vpop.permute.xlu0 %876 }
 0x178   : > { %486 = vrot.lane.b32.xlu1 %v470_v21, %s2061_s9  ;;  %1214 = vrot.lane.b32.xlu0 %v1208_v35, %s2036_s20  ;;  %v936_v21 = vmul.f32 %v2319_v46, %v2205_v36  ;;  %v937_v35 = vmul.f32 0.0, %v2319_v46  ;;  %v809_v46 = vmul.f32 %v2445_v14, %v2200_v33 }
 0x179   : > { %v2548_v56 = vpop.permute.xlu1 %1019  ;;  %v2555_v62 = vpop.permute.xlu0 %588 }
 0x17c   : > { %636 = vrot.lane.b32.xlu1 %v630_v17, %s2041_s8  ;;  %638 = vrot.lane.b32.xlu0 %v631_v27, %s2041_s8  ;;  %v1232_v27 = vmul.f32 0.0, %v2326_v50  ;;  %v811_v50 = vmul.f32 0.0, %v2445_v14 }
 0x17d   : > { %v2558_v29 = vpop.permute.xlu1 %699  ;;  %v2570_v7 = vpop.permute.xlu0 %592 }
 0x180   : > { %640 = vrot.lane.b32.xlu1 %v632_v22, %s2041_s8  ;;  %791 = vrot.lane.b32.xlu0 %v785_v1, %s2040_s29  ;;  %v1387_v22 = vmul.f32 0.0, %v2310_v42 }
 0x181   : > { %v2565_v20 = vpop.permute.xlu1 %695  ;;  %v2581_v5 = vpop.permute.xlu0 %747 }
 0x184   : > { %793 = vrot.lane.b32.xlu1 %v786_v8, %s2040_s29  ;;  %795 = vrot.lane.b32.xlu0 %v787_v26, %s2040_s29  ;;  %v810_v26 = vmul.f32 %v2445_v14, %v2205_v36 }
 0x185   : > { %v2574_v45 = vpop.permute.xlu1 %566  ;;  %v2597_v34 = vpop.permute.xlu0 %1037 }
 0x188   : > { %1083 = vrot.lane.b32.xlu1 %v1077_v58, %s2038_s22  ;;  %1085 = vrot.lane.b32.xlu0 %v1078_v63, %s2038_s22  ;;  %v1101_v63 = vmul.f32 %v2450_v51, %v2200_v33 }
 0x189   : > { %v2584_v30 = vpop.permute.xlu1 %721  ;;  %v2608_v10 = vpop.permute.xlu0 %743 }
 0x18c   : > { %1087 = vrot.lane.b32.xlu1 %v1079_v31, %s2038_s22  ;;  %1240 = vrot.lane.b32.xlu0 %v1233_v12, %s2037_s21  ;;  %v1102_v12 = vmul.f32 %v2450_v51, %v2205_v36 }
 0x18d   : > { %v2591_v38 = vpop.permute.xlu1 %1377  ;;  %v2622_v1 = vpop.permute.xlu0 %902 }
 0x18e   : > { %3165 = vst [vmem:[#allocation7_spill] sm:$0xff] %v2622_v1  ;;  %v1281_v1 = vmul.f32 %v2461_v59, %v2205_v36 }
 0x190   : > { %1242 = vrot.lane.b32.xlu1 %v1234_v40, %s2037_s21  ;;  %1395 = vrot.lane.b32.xlu0 %v1388_v3, %s2036_s20  ;;  %v1103_v40 = vmul.f32 0.0, %v2450_v51 }
 0x191   : > { %v2601_v37 = vpop.permute.xlu1 %719  ;;  %v2633_v58 = vpop.permute.xlu0 %612 }
 0x194   : > { %1397 = vrot.lane.b32.xlu1 %v1389_v9, %s2036_s20  ;;  %941 = vrot.lane.b32.xlu0 %v935_v23, %s2039_s23  ;;  %v1256_v9 = vmul.f32 %v2457_v18, %v2200_v33  ;;  %v1257_v23 = vmul.f32 %v2457_v18, %v2205_v36 }
 0x195   : > { %v2611_v49 = vpop.permute.xlu1 %878  ;;  %v2646_v3 = vpop.permute.xlu0 %616 }
 0x198   : > { %943 = vrot.lane.b32.xlu1 %v936_v21, %s2039_s23  ;;  %945 = vrot.lane.b32.xlu0 %v937_v35, %s2039_s23  ;;  %v1258_v35 = vmul.f32 0.0, %v2457_v18 }
 0x199   : > { %v2618_v17 = vpop.permute.xlu1 %590  ;;  %v2657_v21 = vpop.permute.xlu0 %769 }
 0x19c   : > { %1238 = vrot.lane.b32.xlu1 %v1232_v27, %s2037_s21  ;;  %1393 = vrot.lane.b32.xlu0 %v1387_v22, %s2036_s20  ;;  %v1412_v27 = vmul.f32 %v2454_v54, %v2200_v33  ;;  %s269_s20 = sand.u32 1, %s1996_s25  }
 0x19d   : > { %v2626_v8 = vpop.permute.xlu1 %745 }
 0x1a0   : > { %815 = vrot.lane.b32.xlu1 %v809_v46, %s2041_s8  ;;  %817 = vrot.lane.b32.xlu0 %v810_v26, %s2041_s8  ;;  %v1413_v46 = vmul.f32 %v2454_v54, %v2205_v36  ;;  %v959_v26 = vmul.f32 %v2465_v61, %v2200_v33 }
 0x1a1   : > { %v875_v42 = vpop.permute.xlu1 %874 }
 0x1a4   : > { %819 = vrot.lane.b32.xlu1 %v811_v50, %s2041_s8  ;;  %1107 = vrot.lane.b32.xlu0 %v1101_v63, %s2039_s23  ;;  %v899_v50 = vpop.permute.xlu0 %898  ;;  %v960_v63 = vmul.f32 %v2465_v61, %v2205_v36 }
 0x1a5   : > { %v2641_v31 = vpop.permute.xlu1 %1039 }
 0x1a8   : > { %1109 = vrot.lane.b32.xlu1 %v1102_v12, %s2039_s23  ;;  %1111 = vrot.lane.b32.xlu0 %v1103_v40, %s2039_s23  ;;  %v961_v12 = vmul.f32 0.0, %v2465_v61  ;;  %v2681_v40 = vpop.permute.xlu0 %1063  ;;  %v1126_v61 = vmul.f32 %v2470_v6, %v2205_v36 }
 0x1a9   : > { %v2650_v14 = vpop.permute.xlu1 %900 }
 0x1aa   : > { %3166 = vst [vmem:[#allocation8_spill] sm:$0xff] %v2650_v14 }
 0x1ac   : > { %1262 = vrot.lane.b32.xlu1 %v1256_v9, %s2038_s22  ;;  %1264 = vrot.lane.b32.xlu0 %v1257_v23, %s2038_s22  ;;  %v1411_v23 = vmul.f32 0.0, %v2454_v54  ;;  %v861_v54 = vmul.f32 0.0, %v2541_v53  ;;  %v1435_v53 = vmul.f32 %v2474_v0, %v2200_v33 }
 0x1ad   : > { %v2660_v51 = vpop.permute.xlu1 %1035 }
 0x1b0   : > { %1266 = vrot.lane.b32.xlu1 %v1258_v35, %s2038_s22  ;;  %1419 = vrot.lane.b32.xlu0 %v1412_v27, %s2037_s21  ;;  %v1125_v35 = vmul.f32 %v2470_v6, %v2200_v33 }
 0x1b1   : > { %v2667_v22 = vpop.permute.xlu1 %614 }
 0x1b4   : > { %1421 = vrot.lane.b32.xlu1 %v1413_v46, %s2037_s21  ;;  %965 = vrot.lane.b32.xlu0 %v959_v26, %s2040_s29  ;;  %v1127_v46 = vmul.f32 0.0, %v2470_v6  ;;  %v880_v26 = vsel %vm339_vm0, %v875_v42, %v2544_v55 }
 0x1b5   : > { %v2675_v18 = vpop.permute.xlu1 %767  ;;  %v885_v6 = vadd.f32 %v880_v26, %v861_v54 }
 0x1b8   : > { %967 = vrot.lane.b32.xlu1 %v960_v63, %s2040_s29  ;;  %969 = vrot.lane.b32.xlu0 %v961_v12, %s2040_s29  ;;  %v2698_v63 = vpop.permute.xlu0 %1218  ;;  %v904_v12 = vsel %vm364_vm1, %v899_v50, %v2650_v14  ;;  %v1282_v14 = vmul.f32 0.0, %v2461_v59 }
 0x1b9   : > { %v2684_v9 = vpop.permute.xlu1 %771 }
 0x1bc   : > { %1417 = vrot.lane.b32.xlu1 %v1411_v23, %s2037_s21  ;;  %1131 = vrot.lane.b32.xlu0 %v1125_v35, %s2040_s29  ;;  %v1280_v35 = vmul.f32 %v2461_v59, %v2200_v33  ;;  %v2717_v50 = vpop.permute.xlu0 %922  ;;  %v983_v59 = vmul.f32 %v2478_v25, %v2200_v33  ;;  %s1775_s21 = sshll.u32 %s269_s20, 5 }
 0x1bd   : > { %v2691_v27 = vpop.permute.xlu1 %1061 }
 0x1c0   : > { %1133 = vrot.lane.b32.xlu1 %v1126_v61, %s2040_s29  ;;  %1135 = vrot.lane.b32.xlu0 %v1127_v46, %s2040_s29  ;;  %v909_v61 = vadd.f32 %v904_v12, %v885_v6  ;;  %v1436_v12 = vmul.f32 %v2474_v0, %v2205_v36  ;;  %v1151_v6 = vmul.f32 0.0, %v2467_v4 }
 0x1c1   : > { %v2705_v23 = vpop.permute.xlu1 %1216 }
 0x1c2   : > { %v2712_v42 = vsel %vm339_vm0, %v2705_v23, %v2698_v63 }
 0x1c4   : > { %1286 = vrot.lane.b32.xlu1 %v1280_v35, %s2039_s23  ;;  %1288 = vrot.lane.b32.xlu0 %v1281_v1, %s2039_s23  ;;  %v1437_v1 = vmul.f32 0.0, %v2474_v0  ;;  %v984_v35 = vmul.f32 %v2478_v25, %v2205_v36  ;;  %v1150_v0 = vmul.f32 %v2467_v4, %v2205_v36 }
 0x1c5   : > { %v921_v46 = vpop.permute.xlu1 %920 }
 0x1c6   : > { %v2723_v26 = vsel %vm389_vm2, %v921_v46, %v2717_v50  ;;  %v2725_v54 = vadd.f32 %v921_v46, %v909_v61  ;;  %v1304_v61 = vmul.f32 %v2484_v41, %v2200_v33  ;;  %v1306_v46 = vmul.f32 0.0, %v2484_v41 }
 0x1c8   : > { %1290 = vrot.lane.b32.xlu1 %v1282_v14, %s2039_s23  ;;  %1441 = vrot.lane.b32.xlu0 %v1435_v53, %s2038_s22  ;;  %v985_v53 = vmul.f32 0.0, %v2478_v25  ;;  %v1149_v14 = vmul.f32 %v2467_v4, %v2200_v33  ;;  %v1305_v25 = vmul.f32 %v2484_v41, %v2205_v36  ;;  %v1460_v4 = vmul.f32 %v2486_v24, %v2205_v36 }
 0x1c9   : > { %v1328_v41 = vmul.f32 %v2472_v11, %v2200_v33 }
 0x1cc   : > { %1443 = vrot.lane.b32.xlu1 %v1436_v12, %s2038_s22  ;;  %1445 = vrot.lane.b32.xlu0 %v1437_v1, %s2038_s22  ;;  %v1459_v12 = vmul.f32 %v2486_v24, %v2200_v33  ;;  %v2765_v1 = vpop.permute.xlu1 %1059  ;;  %s271_s22 = scalar_lea.vmem [#allocation3], %s1775_s21 }
 0x1d0   : > { %989 = vrot.lane.b32.xlu1 %v983_v59, %s2041_s8  ;;  %991 = vrot.lane.b32.xlu0 %v984_v35, %s2041_s8  ;;  %v1461_v59 = vmul.f32 0.0, %v2486_v24  ;;  %v523_v24 = vsel %vm339_vm0, %v2431_v43, %v2426_v39 }
 0x1d4   : > { %993 = vrot.lane.b32.xlu1 %v985_v53, %s2041_s8  ;;  %1155 = vrot.lane.b32.xlu0 %v1149_v14, %s2041_s8  ;;  %v1329_v53 = vmul.f32 %v2472_v11, %v2205_v36 }
 0x1d8   : > { %1157 = vrot.lane.b32.xlu1 %v1150_v0, %s2041_s8  ;;  %1159 = vrot.lane.b32.xlu0 %v1151_v6, %s2041_s8  ;;  %v1330_v6 = vmul.f32 0.0, %v2472_v11 }
 0x1dc   : > { %1310 = vrot.lane.b32.xlu1 %v1304_v61, %s2040_s29  ;;  %1312 = vrot.lane.b32.xlu0 %v1305_v25, %s2040_s29  ;;  %v504_v25 = vmul.f32 %v2232_v57, %v2200_v33 }
 0x1e0   : > { %1314 = vrot.lane.b32.xlu1 %v1306_v46, %s2040_s29  ;;  %1465 = vrot.lane.b32.xlu0 %v1459_v12, %s2039_s23  ;;  %v1483_v46 = vmul.f32 %v2506_v60, %v2200_v33 }
 0x1e4   : > { %1467 = vrot.lane.b32.xlu1 %v1460_v4, %s2039_s23  ;;  %1469 = vrot.lane.b32.xlu0 %v1461_v59, %s2039_s23  ;;  %v522_v59 = vsel %vm339_vm0, %v2419_v32, %v2431_v43  ;;  %v546_v32 = vsel %vm364_vm1, %v2436_v44, %v2442_v48  ;;  %v1484_v43 = vmul.f32 %v2506_v60, %v2205_v36  ;;  %s1709_s23 = sshll.u32 %s271_s22, 4  ;;  %s3103_s23 = int_to_ptr.vmem [resolvable:$true] %s1709_s23 }
 0x1e5   : > { %v594_v44 = vsel %vm414_vm3, %v2555_v62, %v2618_v17 }
 0x1e6   : > { %v491_v35 = vpop.permute.xlu1 %490  ;;  %v489_v14 = vpop.permute.xlu0 %488 }
 0x1e7   : > { %v2774_v0 = vsel %vm492_vm6, %v489_v14, %v491_v35  ;;  %v503_v35 = vmul.f32 0.0, %v2232_v57 }
 0x1e8   : > { %1334 = vrot.lane.b32.xlu1 %v1328_v41, %s2041_s8  ;;  %1336 = vrot.lane.b32.xlu0 %v1329_v53, %s2041_s8  ;;  %v547_v41 = vsel %vm364_vm1, %v2442_v48, %v2439_v47  ;;  %v528_v53 = vadd.f32 %v523_v24, %v504_v25  ;;  %v1485_v24 = vmul.f32 0.0, %v2506_v60  ;;  %v1507_v60 = vmul.f32 %v2527_v2, %v2200_v33 }
 0x1e9   : > { %v1041_v33 = vsel %vm339_vm0, %v2660_v51, %v2597_v34 }
 0x1ea   : > { %v487_v61 = vpop.permute.xlu1 %486  ;;  %v1215_v12 = vpop.permute.xlu0 %1214 }
 0x1eb   : > { %v2786_v4 = vsel %vm492_vm6, %v487_v61, %v489_v14  ;;  %v2796_v11 = vsel %vm339_vm0, %v1215_v12, %v2705_v23  ;;  %v505_v14 = vmul.f32 %v2232_v57, %v2205_v36  ;;  %v571_v23 = vsel %vm389_vm2, %v2574_v45, %v2503_v52 }
 0x1ec   : > { %3167 = vst [vmem:[#allocation9_spill] sm:$0xff] %v2786_v4  ;;  %1338 = vrot.lane.b32.xlu1 %v1330_v6, %s2041_s8  ;;  %1489 = vrot.lane.b32.xlu0 %v1483_v46, %s2040_s29  ;;  %v527_v61 = vadd.f32 %v522_v59, %v503_v35  ;;  %v552_v12 = vadd.f32 %v547_v41, %v528_v53  ;;  %vm1546_vm6 = vcmask 367616  }
 0x1ed   : > { %v529_v46 = vadd.f32 %v2426_v39, %v505_v14  ;;  %v570_v57 = vsel %vm389_vm2, %v2535_v16, %v2574_v45  ;;  %v618_v39 = vsel %vm439_vm4, %v2633_v58, %v2667_v22  ;;  %v1508_v45 = vmul.f32 %v2527_v2, %v2205_v36 }
 0x1ee   : > { %v637_v6 = vpop.permute.xlu1 %636  ;;  %v639_v25 = vpop.permute.xlu0 %638  ;;  %v551_v48 = vadd.f32 %v546_v32, %v527_v61  ;;  %v576_v4 = vadd.f32 %v571_v23, %v552_v12  ;;  %v595_v35 = vsel %vm414_vm3, %v2618_v17, %v2570_v7  ;;  %v1509_v36 = vmul.f32 0.0, %v2527_v2 }
 0x1ef   : > { %v553_v59 = vadd.f32 %v2439_v47, %v529_v46  ;;  %v642_v32 = vsel %vm464_vm5, %v637_v6, %v639_v25  ;;  %v619_v7 = vsel %vm439_vm4, %v2667_v22, %v2646_v3  ;;  %v1042_v2 = vsel %vm339_vm0, %v2597_v34, %v2641_v31 }
 0x1f0   : > { %1491 = vrot.lane.b32.xlu1 %v1484_v43, %s2040_s29  ;;  %1493 = vrot.lane.b32.xlu0 %v1485_v24, %s2040_s29  ;;  %v575_v41 = vadd.f32 %v570_v57, %v551_v48  ;;  %v600_v53 = vadd.f32 %v594_v44, %v576_v4  ;;  %v1022_v43 = vmul.f32 0.0, %v2548_v56  ;;  %v1065_v23 = vsel %vm364_vm1, %v2765_v1, %v2691_v27  ;;  %v2864_v57 = vld [vmem:[%s2197_s19 + $0x8] sm:$0xff] }
 0x1f1   : > { %v577_v47 = vadd.f32 %v2503_v52, %v553_v59  ;;  %v2847_v52 = vld [vmem:[%s2197_s19] sm:$0xff]  ;;  %v1024_v44 = vmul.f32 %v2864_v57, %v2548_v56  ;;  %v1066_v1 = vsel %vm364_vm1, %v2691_v27, %v2681_v40  ;;  %s2066_s19 = smov 45  }
 0x1f2   : > { %v641_v16 = vpop.permute.xlu1 %640  ;;  %v2832_v14 = vpop.permute.xlu0 %791  ;;  %v624_v17 = vadd.f32 %v618_v39, %v600_v53  ;;  %v1023_v51 = vmul.f32 %v2847_v52, %v2548_v56  ;;  %v599_v3 = vadd.f32 %v2555_v62, %v575_v41  ;;  %v1046_v22 = vadd.f32 %v1041_v33, %v1022_v43 }
 0x1f3   : > { %v601_v4 = vadd.f32 %v595_v35, %v577_v47  ;;  %v643_v24 = vsel %vm464_vm5, %v639_v25, %v641_v16  ;;  %v1048_v25 = vadd.f32 %v2641_v31, %v1024_v44  ;;  %v1203_v47 = vmul.f32 %v2864_v57, %v2482_v19 }
 0x1f4   : > { %1513 = vrot.lane.b32.xlu1 %v1507_v60, %s2041_s8  ;;  %1515 = vrot.lane.b32.xlu0 %v1508_v45, %s2041_s8  ;;  %v648_v12 = vadd.f32 %v642_v32, %v624_v17  ;;  %v623_v62 = vadd.f32 %v2633_v58, %v599_v3  ;;  %v1047_v48 = vadd.f32 %v1042_v2, %v1023_v51 }
 0x1f5   : > { %v625_v34 = vadd.f32 %v619_v7, %v601_v4  ;;  %v1070_v59 = vadd.f32 %v1065_v23, %v1046_v22  ;;  %v1072_v58 = vadd.f32 %v2681_v40, %v1048_v25  ;;  %v683_v22 = vmul.f32 %v2847_v52, %v2476_v13 }
 0x1f6   : > { %v2857_v61 = vpop.permute.xlu1 %793  ;;  %v2861_v46 = vpop.permute.xlu0 %795  ;;  %v1071_v16 = vadd.f32 %v1066_v1, %v1047_v48  ;;  %v647_v45 = vadd.f32 %v637_v6, %v623_v62  ;;  %v1202_v6 = vmul.f32 %v2847_v52, %v2482_v19  ;;  %v701_v62 = vsel %vm339_vm0, %v2565_v20, %v2480_v15 }
 0x1f7   : > { %v649_v60 = vadd.f32 %v643_v24, %v625_v34  ;;  %v726_v24 = vsel %vm364_vm1, %v2584_v30, %v2521_v28  ;;  %v750_v48 = vsel %vm389_vm2, %v2626_v8, %v2581_v5 }
 0x1f8   : > { %1517 = vrot.lane.b32.xlu1 %v1509_v36, %s2041_s8  ;;  %665 = vrot.lane.b32.xlu0 %v648_v12, %s2062_s13  ;;  %v1227_v36 = vadd.f32 %v2698_v63, %v1203_v47  ;;  %v1226_v43 = vadd.f32 %v2712_v42, %v1202_v6  ;;  %v684_v63 = vmul.f32 %v2864_v57, %v2476_v13 }
 0x1f9   : > { %v702_v42 = vsel %vm339_vm0, %v2480_v15, %v2558_v29 }
 0x1fa   : > { %v1084_v39 = vpop.permute.xlu1 %1083  ;;  %v1086_v56 = vpop.permute.xlu0 %1085  ;;  %v708_v12 = vadd.f32 %v2558_v29, %v684_v63  ;;  %v707_v34 = vadd.f32 %v702_v42, %v683_v22  ;;  %v682_v29 = vmul.f32 0.0, %v2476_v13  ;;  %v749_v13 = vsel %vm389_vm2, %v2608_v10, %v2626_v8 }
 0x1fb   : > { %v2874_v41 = vadd.f32 %v1084_v39, %v1070_v59  ;;  %v1089_v35 = vsel %vm389_vm2, %v1084_v39, %v1086_v56  ;;  %v1201_v59 = vmul.f32 0.0, %v2482_v19  ;;  %v725_v39 = vsel %vm364_vm1, %v2601_v37, %v2584_v30 }
 0x1fc   : > { %667 = vrot.lane.b32.xlu1 %v649_v60, %s2062_s13  ;;  %v2877_v27 = vadd.f32 %v1089_v35, %v1071_v16  ;;  %663 = vrot.lane.b32.xlu0 %v647_v45, %s2062_s13  ;;  %v731_v25 = vadd.f32 %v726_v24, %v707_v34  ;;  %v732_v60 = vadd.f32 %v2521_v28, %v708_v12 }
 0x1fd   : > { %v773_v16 = vsel %vm414_vm3, %v2675_v18, %v2657_v21  ;;  %v1225_v15 = vadd.f32 %v2796_v11, %v1201_v59  ;;  %v706_v45 = vadd.f32 %v701_v62, %v682_v29  ;;  %v797_v28 = vsel %vm439_vm4, %v2832_v14, %v2857_v61 }
 0x1fe   : > { %v1088_v53 = vpop.permute.xlu1 %1087  ;;  %v1241_v31 = vpop.permute.xlu0 %1240  ;;  %v756_v47 = vadd.f32 %v2581_v5, %v732_v60  ;;  %v798_v10 = vsel %vm439_vm4, %v2857_v61, %v2861_v46  ;;  %v1380_v29 = vmul.f32 0.0, %v2591_v38 }
 0x1ff   : > { %v1090_v33 = vsel %vm389_vm2, %v1086_v56, %v1088_v53  ;;  %v755_v56 = vadd.f32 %v750_v48, %v731_v25  ;;  %v774_v53 = vsel %vm414_vm3, %v2657_v21, %v2684_v9 }
 0x200   : > { %v2885_v32 = vadd.f32 %v1090_v33, %v1072_v58  ;;  %v730_v58 = vadd.f32 %v725_v39, %v706_v45 }
 0x201   : > { %v779_v11 = vadd.f32 %v773_v16, %v755_v56 }
 0x202   : > { %v1243_v7 = vpop.permute.xlu1 %1242  ;;  %v1396_v17 = vpop.permute.xlu0 %1395  ;;  %v754_v33 = vadd.f32 %v749_v13, %v730_v58  ;;  %v3168_v13 = vld [vmem:[#allocation6_spill] sm:$0xff]  ;;  %v3169_v58 = vld [vmem:[#allocation7_spill] sm:$0xff] }
 0x203   : > { %v1245_v40 = vsel %vm364_vm1, %v1241_v31, %v1243_v7  ;;  %v2890_v51 = vadd.f32 %v1243_v7, %v1227_v36  ;;  %v803_v8 = vadd.f32 %v797_v28, %v779_v11  ;;  %v780_v36 = vadd.f32 %v774_v53, %v756_v47  ;;  %v3170_v11 = vld [vmem:[#allocation8_spill] sm:$0xff] }
 0x204   : > { %v2892_v4 = vadd.f32 %v1245_v40, %v1226_v43  ;;  %v778_v7 = vadd.f32 %v2675_v18, %v754_v33  ;;  %v862_v28 = vmul.f32 %v2847_v52, %v3168_v13  ;;  %v905_v53 = vsel %vm364_vm1, %v3170_v11, %v3169_v58 }
 0x205   : > { %v804_v40 = vadd.f32 %v798_v10, %v780_v36 }
 0x206   : > { %v2894_v2 = vpop.permute.xlu1 %1397  ;;  %v2896_v23 = vpop.permute.xlu0 %941  ;;  %v802_v21 = vadd.f32 %v2832_v14, %v778_v7 }
 0x207   : > { %v2900_v3 = vsel %vm339_vm0, %v1396_v17, %v2894_v2 }
 0x20a   : > { %v2913_v44 = vpop.permute.xlu1 %943  ;;  %v2915_v1 = vpop.permute.xlu0 %945 }
 0x20e   : > { %v1239_v20 = vpop.permute.xlu1 %1238  ;;  %v1394_v35 = vpop.permute.xlu0 %1393 }
 0x20f   : > { %v1244_v19 = vsel %vm364_vm1, %v1239_v20, %v1241_v31  ;;  %v1399_v30 = vsel %vm339_vm0, %v1394_v35, %v1396_v17 }
 0x210   : > { %v2941_v37 = vadd.f32 %v1244_v19, %v1225_v15  ;;  %v1404_v25 = vadd.f32 %v1399_v30, %v1380_v29  ;;  %v881_v19 = vsel %vm339_vm0, %v2544_v55, %v2611_v49  ;;  %v863_v30 = vmul.f32 %v2864_v57, %v3168_v13 }
 0x211   : > { %v947_v55 = vsel %vm414_vm3, %v2896_v23, %v2913_v44 }
 0x212   : > { %v816_v31 = vpop.permute.xlu1 %815  ;;  %v818_v6 = vpop.permute.xlu0 %817  ;;  %v887_v10 = vadd.f32 %v2611_v49, %v863_v30 }
 0x213   : > { %v821_v43 = vsel %vm464_vm5, %v816_v31, %v818_v6  ;;  %v826_v61 = vadd.f32 %v816_v31, %v802_v21  ;;  %v886_v31 = vadd.f32 %v881_v19, %v862_v28 }
 0x214   : > { %v827_v17 = vadd.f32 %v821_v43, %v803_v8  ;;  %v911_v7 = vadd.f32 %v3169_v58, %v887_v10 }
 0x215   : > { %v910_v8 = vadd.f32 %v905_v53, %v886_v31 }
 0x216   : > { %v820_v63 = vpop.permute.xlu1 %819  ;;  %v2953_v9 = vpop.permute.xlu0 %1107  ;;  %844 = vrot.lane.b32.xlu1 %v827_v17, %s2063_s14 }
 0x217   : > { %v822_v5 = vsel %vm464_vm5, %v818_v6, %v820_v63  ;;  %v929_v36 = vadd.f32 %v2723_v26, %v910_v8  ;;  %v930_v63 = vadd.f32 %v2717_v50, %v911_v7  ;;  %v1118_v31 = vadd.f32 %v2953_v9, %v2874_v41 }
 0x218   : > { %v828_v42 = vadd.f32 %v822_v5, %v804_v40  ;;  %v948_v40 = vsel %vm414_vm3, %v2913_v44, %v2915_v1 }
 0x219   : > { %v953_v49 = vadd.f32 %v947_v55, %v929_v36  ;;  %v954_v29 = vadd.f32 %v948_v40, %v930_v63 }
 0x21a   : > { %846 = vrot.lane.b32.xlu0 %v828_v42, %s2063_s14  ;;  %v1110_v46 = vpop.permute.xlu1 %1109  ;;  %v1112_v22 = vpop.permute.xlu0 %1111  ;;  %842 = vrot.lane.b32.xlu1 %v826_v61, %s2063_s14  ;;  %s1944_s14 = scalar_lea.vmem %s3103_s23, 512 }
 0x21b   : > { %v1114_v44 = vsel %vm414_vm3, %v1110_v46, %v1112_v22  ;;  %p1945_p11 = scmp.ne.s32.totalorder %s3103_s23, %s1944_s14 }
 0x21c   : > { %v1120_v30 = vadd.f32 %v1114_v44, %v2885_v32 }
 0x21d   : > { %p1946_p12 = pnand %p1945_p11, %p2149_p5 }
 0x21e   : > { %v2956_v12 = vpop.permute.xlu1 %1262  ;;  %v2958_v18 = vpop.permute.xlu0 %1264 }
 0x21f   : > { %p1947_p13 = pneg %p1946_p12 }
 0x222   : > { %v2960_v24 = vpop.permute.xlu1 %1266  ;;  %v2962_v34 = vpop.permute.xlu0 %1419 }
 0x223   : > { %v1269_v40 = vsel %vm389_vm2, %v2958_v18, %v2960_v24  ;;  %v1381_v24 = vmul.f32 %v2847_v52, %v2591_v38  ;;  %v1382_v52 = vmul.f32 %v2864_v57, %v2591_v38  ;;  %v1555_v38 = vld [vmem:[%s3152_s2] sm:$0xff] }
 0x226   : > { %v2964_v14 = vpop.permute.xlu1 %1421  ;;  %v966_v62 = vpop.permute.xlu0 %965 }
 0x22a   : > { %v968_v48 = vpop.permute.xlu1 %967  ;;  %v970_v59 = vpop.permute.xlu0 %969 }
 0x22b   : > { %v971_v17 = vsel %vm439_vm4, %v966_v62, %v968_v48  ;;  %v972_v5 = vsel %vm439_vm4, %v968_v48, %v970_v59 }
 0x22c   : > { %v977_v42 = vadd.f32 %v971_v17, %v953_v49  ;;  %v978_v1 = vadd.f32 %v972_v5, %v954_v29  ;;  %v1268_v17 = vsel %vm389_vm2, %v2956_v12, %v2958_v18  ;;  %v1273_v29 = vadd.f32 %v2956_v12, %v2941_v37 }
 0x22d   : > { %v1405_v37 = vadd.f32 %v2900_v3, %v1381_v24 }
 0x22e   : > { %v1418_v60 = vpop.permute.xlu1 %1417  ;;  %v1132_v39 = vpop.permute.xlu0 %1131 }
 0x22f   : > { %v1423_v16 = vsel %vm364_vm1, %v1418_v60, %v2962_v34  ;;  %v1113_v60 = vsel %vm414_vm3, %v2953_v9, %v1110_v46  ;;  %v1142_v10 = vadd.f32 %v1132_v39, %v1118_v31 }
 0x230   : > { %v2969_v15 = vadd.f32 %v1423_v16, %v1404_v25  ;;  %v952_v25 = vadd.f32 %v2896_v23, %v2725_v54  ;;  %v1119_v28 = vadd.f32 %v1113_v60, %v2877_v27 }
 0x232   : > { %v1134_v20 = vpop.permute.xlu1 %1133  ;;  %v1136_v45 = vpop.permute.xlu0 %1135  ;;  %v976_v50 = vadd.f32 %v966_v62, %v952_v25 }
 0x233   : > { %v1137_v13 = vsel %vm439_vm4, %v1132_v39, %v1134_v20  ;;  %v1138_v54 = vsel %vm439_vm4, %v1134_v20, %v1136_v45  ;;  %v1274_v39 = vadd.f32 %v1268_v17, %v2892_v4  ;;  %v2067_v17 = vmov 0.0  }
 0x234   : > { %v1143_v11 = vadd.f32 %v1137_v13, %v1119_v28  ;;  %v1144_v22 = vadd.f32 %v1138_v54, %v1120_v30  ;;  %1646 = vmatprep.mubr.f32.mxu0 %v2067_v17  ;;  %1652 = vmatprep.mubr.f32.mxu1 %v2067_v17 }
 0x236   : > { %v2971_v56 = vpop.permute.xlu1 %1286  ;;  %v2973_v35 = vpop.permute.xlu0 %1288 }
 0x237   : > { %v1292_v41 = vsel %vm414_vm3, %v2971_v56, %v2973_v35 }
 0x23a   : > { %v2985_v47 = vpop.permute.xlu1 %1290  ;;  %v2987_v33 = vpop.permute.xlu0 %1441 }
 0x23b   : > { %v1293_v5 = vsel %vm414_vm3, %v2973_v35, %v2985_v47 }
 0x23e   : > { %v2993_v6 = vpop.permute.xlu1 %1443  ;;  %v2996_v43 = vpop.permute.xlu0 %1445 }
 0x23f   : > { %v1448_v28 = vsel %vm389_vm2, %v2993_v6, %v2996_v43 }
 0x242   : > { %v990_v21 = vpop.permute.xlu1 %989  ;;  %v992_v61 = vpop.permute.xlu0 %991 }
 0x243   : > { %v995_v26 = vsel %vm464_vm5, %v990_v21, %v992_v61  ;;  %v1000_v58 = vadd.f32 %v990_v21, %v976_v50  ;;  %v1298_v21 = vadd.f32 %v1292_v41, %v1274_v39  ;;  %v1675_v41 = vld [vmem:[%s3156_s6] sm:$0xff] }
 0x244   : > { %v1001_v16 = vadd.f32 %v995_v26, %v977_v42  ;;  %v1275_v42 = vadd.f32 %v1269_v40, %v2890_v51  ;;  %v1424_v51 = vsel %vm364_vm1, %v2962_v34, %v2964_v14 }
 0x245   : > { %v1429_v13 = vadd.f32 %v1424_v51, %v1405_v37 }
 0x246   : > { %v994_v19 = vpop.permute.xlu1 %993  ;;  %v1156_v48 = vpop.permute.xlu0 %1155  ;;  %1008 = vrot.lane.b32.xlu0 %v1001_v16, %s2040_s29  ;;  %v1299_v60 = vadd.f32 %v1293_v5, %v1275_v42  ;;  %v1297_v16 = vadd.f32 %v2971_v56, %v1273_v29  ;;  %v1447_v56 = vsel %vm389_vm2, %v2987_v33, %v2993_v6  ;;  %v1452_v6 = vadd.f32 %v2987_v33, %v2969_v15  ;;  %v1563_v15 = vld [vmem:[%s3153_s3] sm:$0xff] }
 0x247   : > { %v996_v59 = vsel %vm464_vm5, %v992_v61, %v994_v19  ;;  %v1166_v55 = vadd.f32 %v1156_v48, %v1142_v10  ;;  %v1453_v54 = vadd.f32 %v1447_v56, %v1429_v13  ;;  %v1659_v33 = vld [vmem:[%s3155_s5] sm:$0xff]  ;;  %v288_v5 = vlaneseq  ;;  %v3171_v56 = vld [vmem:[#allocation9_spill] sm:$0xff] }
 0x248   : > { %v1002_v23 = vadd.f32 %v996_v59, %v978_v1 }
 0x249   : > { %v289_v29 = vand.u32 127, %v288_v5 }
 0x24a   : > { %1010 = vrot.lane.b32.xlu1 %v1002_v23, %s2040_s29  ;;  %v1158_v46 = vpop.permute.xlu1 %1157  ;;  %v1160_v62 = vpop.permute.xlu0 %1159  ;;  %1006 = vrot.lane.b32.xlu0 %v1000_v58, %s2040_s29  ;;  %s1786_s29 = sshll.u32 %s2132_s28, 9  ;;  %s3110_s28 = scalar_lea.sflag [#allocation4], %s269_s20 }
 0x24b   : > { %v1161_v53 = vsel %vm464_vm5, %v1156_v48, %v1158_v46  ;;  %v1162_v27 = vsel %vm464_vm5, %v1158_v46, %v1160_v62  ;;  %v1406_v48 = vadd.f32 %v2894_v2, %v1382_v52  ;;  %s3108_s13 = scalar_lea.hbm %s3157_s7, %s1786_s29 }
 0x24c   : > { %v1167_v20 = vadd.f32 %v1161_v53, %v1143_v11  ;;  %v1168_v45 = vadd.f32 %v1162_v27, %v1144_v22 }
 0x24d   : > { %v1430_v57 = vadd.f32 %v2964_v14, %v1406_v48 }
 0x24e   : > { %1184 = vrot.lane.b32.xlu1 %v1167_v20, %s2064_s15  ;;  %v1311_v32 = vpop.permute.xlu1 %1310  ;;  %v1313_v8 = vpop.permute.xlu0 %1312  ;;  %1186 = vrot.lane.b32.xlu0 %v1168_v45, %s2064_s15 }
 0x24f   : > { %v1316_v63 = vsel %vm439_vm4, %v1311_v32, %v1313_v8  ;;  %v1321_v12 = vadd.f32 %v1311_v32, %v1297_v16  ;;  %v1454_v11 = vadd.f32 %v1448_v28, %v1430_v57  ;;  %v295_v16 = vand.u32 15, %v289_v29 }
 0x250   : > { %v1322_v26 = vadd.f32 %v1316_v63, %v1298_v21 }
 0x251   : > { %vm650_vm9 = vcmp.ge.s32.totalorder %v295_v16, 2  ;;  %vm473_vm12 = vcmp.ge.s32.totalorder %v295_v16, 3  ;;  %vm829_vm14 = vcmp.ge.s32.totalorder %v295_v16, 1  ;;  %vm1171_vm1 = vcmp.lt.s32.totalorder %v295_v16, 15 }
 0x252   : > { %1182 = vrot.lane.b32.xlu1 %v1166_v55, %s2064_s15  ;;  %v1315_v36 = vpop.permute.xlu1 %1314  ;;  %v1466_v7 = vpop.permute.xlu0 %1465  ;;  %vm1350_vm2 = vcmp.lt.s32.totalorder %v295_v16, 14  ;;  %s2068_s15 = smov [#allocation3]  }
 0x253   : > { %v1317_v4 = vsel %vm439_vm4, %v1313_v8, %v1315_v36  ;;  %v1476_v27 = vadd.f32 %v1466_v7, %v1452_v6  ;;  %v1660_v36 = vld [vmem:[%s3155_s5 + $0x8] sm:$0xff] }
 0x254   : > { %v1323_v35 = vadd.f32 %v1317_v4, %v1299_v60 }
 0x256   : > { %v1468_v9 = vpop.permute.xlu1 %1467  ;;  %v1470_v49 = vpop.permute.xlu0 %1469 }
 0x257   : > { %v1471_v3 = vsel %vm414_vm3, %v1466_v7, %v1468_v9  ;;  %v1472_v2 = vsel %vm414_vm3, %v1468_v9, %v1470_v49  ;;  %v1676_v7 = vld [vmem:[%s3156_s6 + $0x8] sm:$0xff]  ;;  %vm1367_vm3 = vcmask 375808  }
 0x258   : > { %v1477_v58 = vadd.f32 %v1471_v3, %v1453_v54  ;;  %v1478_v53 = vadd.f32 %v1472_v2, %v1454_v11 }
 0x25a   : > { %v1335_v61 = vpop.permute.xlu1 %1334  ;;  %v1337_v25 = vpop.permute.xlu0 %1336 }
 0x25b   : > { %v1340_v18 = vsel %vm464_vm5, %v1335_v61, %v1337_v25  ;;  %v1345_v34 = vadd.f32 %v1335_v61, %v1321_v12 }
 0x25c   : > { %v1346_v44 = vadd.f32 %v1340_v18, %v1322_v26 }
 0x25e   : > { %v1339_v47 = vpop.permute.xlu1 %1338  ;;  %v1490_v1 = vpop.permute.xlu0 %1489  ;;  %1363 = vrot.lane.b32.xlu0 %v1346_v44, %s2065_s16 }
 0x25f   : > { %v1341_v19 = vsel %vm464_vm5, %v1337_v25, %v1339_v47  ;;  %v1500_v10 = vadd.f32 %v1490_v1, %v1476_v27  ;;  %v290_v25 = vadd.s32 128, %v289_v29 }
 0x260   : > { %v1347_v50 = vadd.f32 %v1341_v19, %v1323_v35 }
 0x261   : > { %v302_v24 = vand.u32 15, %v290_v25 }
 0x262   : > { %1365 = vrot.lane.b32.xlu1 %v1347_v50, %s2065_s16  ;;  %v1492_v59 = vpop.permute.xlu1 %1491  ;;  %v1494_v23 = vpop.permute.xlu0 %1493  ;;  %1361 = vrot.lane.b32.xlu0 %v1345_v34, %s2065_s16  ;;  %v497_v50 = vsel %vm473_vm12, %v3171_v56, 0.0  ;;  %s1948_s16 = sshll.u32 %s2068_s15, 4  ;;  %s1949_s16 = int_to_ptr.vmem [resolvable:$false] %s1948_s16 }
 0x263   : > { %v1495_v30 = vsel %vm439_vm4, %v1490_v1, %v1492_v59  ;;  %v1496_v43 = vsel %vm439_vm4, %v1492_v59, %v1494_v23  ;;  %vm651_vm10 = vcmp.ge.s32.totalorder %v302_v24, 2  ;;  %vm474_vm11 = vcmp.ge.s32.totalorder %v302_v24, 3  ;;  %s1950_s17 = scalar_lea.vmem %s1949_s16, 1024  ;;  %p1951_p0 = scmp.lt.s32.totalorder %s3103_s23, %s1949_s16 }
 0x264   : > { %v1501_v22 = vadd.f32 %v1495_v30, %v1477_v58  ;;  %v1502_v20 = vadd.f32 %v1496_v43, %v1478_v53  ;;  %vm830_vm13 = vcmp.ge.s32.totalorder %v302_v24, 1  ;;  %v498_v52 = vsel %vm474_vm11, %v2774_v0, 0.0  ;;  %p1952_p1 = scmp.lt.s32.totalorder %s1950_s17, %s1944_s14 }
 0x265   : > { %vm1172_vm0 = vcmp.lt.s32.totalorder %v302_v24, 15 }
 0x266   : > { %1558 = vperm.xlu1 %1941, %v1555_v38   ;;  %v1514_v46 = vpop.permute.xlu1 %1513  ;;  %v1516_v62 = vpop.permute.xlu0 %1515  ;;  %p1953_p2 = por %p1952_p1, %p1951_p0 }
 0x267   : > { %v1519_v31 = vsel %vm464_vm5, %v1514_v46, %v1516_v62  ;;  %v1524_v55 = vadd.f32 %v1514_v46, %v1500_v10 }
 0x268   : > { %v1525_v14 = vadd.f32 %v1519_v31, %v1501_v22  ;;  %p1954_p3 = pnand %p1953_p2, %p1947_p13 }
 0x26a   : > { %v1518_v45 = vpop.permute.xlu1 %1517  ;;  %1542 = vrot.lane.b32.xlu0 %v1525_v14, %s2066_s19  ;;  %v666_v9 = vpop.permute.xlu0 %665 }
 0x26b   : > { %v1520_v32 = vsel %vm464_vm5, %v1516_v62, %v1518_v45  ;;  %vm1351_vm5 = vcmp.lt.s32.totalorder %v302_v24, 14 }
 0x26c   : > { %v1526_v8 = vadd.f32 %v1520_v32, %v1502_v20 }
 0x26e   : > { %1544 = vrot.lane.b32.xlu1 %v1526_v8, %s2066_s19  ;;  %1540 = vrot.lane.b32.xlu0 %v1524_v55, %s2066_s19  ;;  %v664_v39 = vpop.permute.xlu0 %663  ;;  %v668_v40 = vpop.permute.xlu1 %667 }
 0x26f   : > { %v670_v44 = vsel %vm669_vm7, %v664_v39, %v666_v9  ;;  %v671_v51 = vsel %vm669_vm7, %v666_v9, %v668_v40  ;;  %vm1529_vm7 = vcmp.lt.s32.totalorder %v295_v16, 13 }
 0x270   : > { %v674_v1 = vsel %vm650_vm9, %v670_v44, 0.0  ;;  %v675_v19 = vsel %vm651_vm10, %v671_v51, 0.0 }
 0x271   : > { %v676_v59 = vadd.f32 %v674_v1, %v497_v50  ;;  %v677_v28 = vadd.f32 %v675_v19, %v498_v52 }
 0x272   : > { %1566 = vperm.xlu1 %1941, %v1563_v15   ;;  %1663 = vperm.xlu0 %1939, %v1659_v33  }
 0x276   : > { %1668 = vperm.xlu1 %1941, %v1660_v36   ;;  %1684 = vperm.xlu0 %1939, %v1676_v7  }
 0x27a   : > { %1679 = vperm.xlu1 %1941, %v1675_v41  }
 0x288   : > { %v845_v63 = vpop.permute.xlu1 %844 }
 0x28c   : > { %v847_v49 = vpop.permute.xlu0 %846  ;;  %v843_v42 = vpop.permute.xlu1 %842 }
 0x28d   : > { %v850_v37 = vsel %vm848_vm8, %v845_v63, %v847_v49  ;;  %v849_v12 = vsel %vm848_vm8, %v843_v42, %v845_v63  ;;  %v1573_v63 = vld [vmem:[%s3154_s4] sm:$0xff]  ;;  %vm1575_vm8 = vcmask 64512  }
 0x28e   : > { %v854_v13 = vsel %vm830_vm13, %v850_v37, 0.0  ;;  %v853_v34 = vsel %vm829_vm14, %v849_v12, 0.0 }
 0x28f   : > { %v856_v0 = vadd.f32 %v854_v13, %v677_v28  ;;  %v855_v30 = vadd.f32 %v853_v34, %v676_v59 }
 0x2b8   : > { %v1009_v21 = vpop.permute.xlu0 %1008 }
 0x2bc   : > { %v1007_v61 = vpop.permute.xlu0 %1006  ;;  %v1011_v26 = vpop.permute.xlu1 %1010 }
 0x2bd   : > { %v1012_v38 = vsel %vm439_vm4, %v1007_v61, %v1009_v21  ;;  %v1013_v57 = vsel %vm439_vm4, %v1009_v21, %v1011_v26  ;;  %vm1530_vm4 = vcmp.lt.s32.totalorder %v302_v24, 13  ;;  %v1574_v21 = vld [vmem:[%s3154_s4 + $0x8] sm:$0xff] }
 0x2be   : > { %v1016_v22 = vadd.f32 %v1012_v38, %v855_v30  ;;  %v1017_v62 = vadd.f32 %v1013_v57, %v856_v0 }
 0x2c0   : > { %v1187_v4 = vpop.permute.xlu0 %1186  ;;  %v1185_v60 = vpop.permute.xlu1 %1184 }
 0x2c1   : > { %v1190_v54 = vsel %vm1188_vm15, %v1185_v60, %v1187_v4 }
 0x2c2   : > { %v1194_v11 = vsel %vm1172_vm0, %v1190_v54, 0.0 }
 0x2c3   : > { %v1196_v14 = vadd.f32 %v1194_v11, %v1017_v62 }
 0x2c4   : > { %v1183_v35 = vpop.permute.xlu1 %1182 }
 0x2c5   : > { %v1189_v23 = vsel %vm1188_vm15, %v1183_v35, %v1185_v60 }
 0x2c6   : > { %v1193_v46 = vsel %vm1171_vm1, %v1189_v23, 0.0 }
 0x2c7   : > { %v1195_v20 = vadd.f32 %v1193_v46, %v1016_v22 }
 0x2d0   : > { %v1364_v18 = vpop.permute.xlu0 %1363 }
 0x2d4   : > { %v1362_v47 = vpop.permute.xlu0 %1361  ;;  %v1366_v48 = vpop.permute.xlu1 %1365 }
 0x2d5   : > { %v1368_v2 = vsel %vm1367_vm3, %v1362_v47, %v1364_v18  ;;  %v1369_v58 = vsel %vm1367_vm3, %v1364_v18, %v1366_v48 }
 0x2d6   : > { %v1372_v31 = vsel %vm1350_vm2, %v1368_v2, 0.0  ;;  %v1373_v27 = vsel %vm1351_vm5, %v1369_v58, 0.0 }
 0x2d7   : > { %v1374_v32 = vadd.f32 %v1372_v31, %v1195_v20  ;;  %v1375_v8 = vadd.f32 %v1373_v27, %v1196_v14 }
 0x2dc   : > { %v1543_v3 = vpop.permute.xlu0 %1542 }
 0x2e0   : > { %v1541_v6 = vpop.permute.xlu0 %1540 }
 0x2e1   : > { %v1559_v43 = vpop.permute.xlu1 %1558  ;;  %v1547_v53 = vsel %vm1546_vm6, %v1541_v6, %v1543_v3 }
 0x2e2   : > { %v1551_v45 = vsel %vm1529_vm7, %v1547_v53, 0.0 }
 0x2e3   : > { %v1553_v33 = vadd.f32 %v1551_v45, %v1374_v32 }
 0x2e5   : > { %v1545_v10 = vpop.permute.xlu1 %1544  ;;  %v1561_v7 = vmul.f32 %v1559_v43, %v1553_v33 }
 0x2e6   : > { %v1548_v55 = vsel %vm1546_vm6, %v1543_v3, %v1545_v10 }
 0x2e7   : > { %v1552_v15 = vsel %vm1530_vm4, %v1548_v55, 0.0 }
 0x2e8   : > { %v1554_v36 = vadd.f32 %v1552_v15, %v1375_v8 }
 0x2ea   : > { %v1562_v17 = vmul.f32 %v1559_v43, %v1554_v36 }
 0x2ed   : > { %v1567_v41 = vpop.permute.xlu1 %1566  ;;  %v1664_v5 = vpop.permute.xlu0 %1663 }
 0x2ee   : > { %v1569_v9 = vadd.f32 %v1567_v41, %v1561_v7  ;;  %v1570_v39 = vadd.f32 %v1567_v41, %v1562_v17 }
 0x2f0   : > { %v1572_v40 = vmax.f32 %v1570_v39, 0.0  ;;  %v1571_v49 = vmax.f32 %v1569_v9, 0.0 }
 0x2f1   : > { %v1669_v42 = vpop.permute.xlu1 %1668  ;;  %v1685_v26 = vpop.permute.xlu0 %1684 }
 0x2f2   : > { %1612 = vmatprep.subr.mxu0 %v1572_v40  ;;  %1787 = vmatprep.subr.mxu1 %v1572_v40 }
 0x2f3   : > { %1613 = vmatpush1.msra.mxu0 %v1571_v49  ;;  %1788 = vmatpush1.msra.mxu1 %v1571_v49 }
 0x2f4   : > { %1778 = vmatmul.mubr.msk.f32.vlgmr.msra.gmra.mxu0 %vm1575_vm8, %v1573_v63  ;;  %1779 = vmatmul.mubr.msk.f32.vlgmr.msra.gmra.mxu1 %vm1575_vm8, %v1574_v21 }
 0x2f5   : > { %v1680_v4 = vpop.permute.xlu1 %1679 }
 0x3b4   : > { %v1648_v61 = vpop.f32.mrf.mxu0  ;;  %v1654_v29 = vpop.f32.mrf.mxu1 }
 0x3b5   : > { %v1671_v25 = vmul.f32 %v1664_v5, %v1648_v61  ;;  %v1673_v60 = vmul.f32 %v1669_v42, %v1654_v29 }
 0x3b6   : > { %v1650_v18 = vpop.f32.mrf.mxu0  ;;  %v1656_v24 = vpop.f32.mrf.mxu1 }
 0x3b7   : > { %v1687_v16 = vadd.f32 %v1680_v4, %v1671_v25  ;;  %v1689_v44 = vadd.f32 %v1685_v26, %v1673_v60  ;;  %v1672_v51 = vmul.f32 %v1664_v5, %v1650_v18  ;;  %v1674_v35 = vmul.f32 %v1669_v42, %v1656_v24 }
 0x3b9   : > { %1691 = vst [vmem:[%s271_s22] sm:$0xff] %v1687_v16  ;;  %1693 = vst [vmem:[%s271_s22 + $0x10] sm:$0xff] %v1689_v44  ;;  %v1688_v47 = vadd.f32 %v1680_v4, %v1672_v51  ;;  %v1690_v37 = vadd.f32 %v1685_v26, %v1674_v35 }
 0x3bb   : > { %1692 = vst [vmem:[%s271_s22 + $0x8] sm:$0xff] %v1688_v47  ;;  %1694 = vst [vmem:[%s271_s22 + $0x18] sm:$0xff] %v1690_v37 }
 0x3bc   : > { %1957 = shalt.err (!%p1954_p3)
}
 0x3bd   : > { %s1958_s18 = scalar_lea.hbm %s3108_s13, 512  ;;  %s1962_s21 = scalar_lea.hbm %s3157_s7, 1024 }
 0x3be   : > { %p1959_p4 = scmp.ne.s32.totalorder %s3108_s13, %s1958_s18  ;;  %p1963_p9 = scmp.lt.s32.totalorder %s3108_s13, %s3157_s7 }
 0x3bf   : > { %p1964_p10 = scmp.lt.s32.totalorder %s1962_s21, %s1958_s18 }
 0x3c0   : > { %p1960_p7 = pnand %p1959_p4, %p2149_p5 }
 0x3c1   : > { %p1965_p11 = por %p1964_p10, %p1963_p9 }
 0x3c2   : > { %p1961_p8 = pneg %p1960_p7 }
 0x3c4   : > { %p1966_p12 = pnand %p1965_p11, %p1961_p8 }
 0x3c6   : > { %1969 = shalt.err (!%p1966_p12)
}
 0x3c7   : > { %s2069_s8 = smov 256   ;;  %s2070_s9 = smov 16  }
 0x3c8   : > { %1789 = dma.vmem_to_hbm [thread:$0]  (%p2149_p5), %s3103_s23, 512, %s3108_s13, %s3110_s28, %s2069_s8, %s2069_s8, %s2070_s9  }
 0x3c9 PF: > { %p1795_p13 = scmp.ge.s32.totalorder %s2004_s27, 2  ;;  %s1724_s14 = sand.u32 1, %s1992_s24  }
 0x3ca   : > { %s1725_s15 = scalar_lea.sflag [#allocation4], %s1724_s14 }
 0x3cb   : > { %p1792_p0 = pnand %p1795_p13, %p2153_p6 }
 0x3cd   : > { %p1793_p1 = pneg %p1792_p0 }
 0x3cf   : > { %1987 = dma.done.wait (%p1793_p1), %s1725_s15, 512  }
 0x3d0   : > { %1989 = vsyncadd (%p1793_p1), %s1725_s15, 4294966784  ;;  %p17_p2 = scmp.ge.s32.totalorder %s2136_s30, 4   ;;  %s3172_s24 = smov %s1996_s25 }
 0x3d1   : > { %s3173_s25 = smov %s2000_s26  ;;  %s3174_s26 = smov %s2147_s10 }
 0x3d2   : > { %s3175_s27 = smov %s2136_s30  ;;  %19 = sbr.rel (!%p17_p2) target bundleno = 3 (0x3), region = 83 }
 0x3d7   :  { %1730 = vsyncpa [#allocation4], 1 }
 0x3d8   :  { %1732 = vsyncpa [#allocation4 + $0x1], 1 }

</bundles_post_ra>
